<compile_context>
chip_gen: v6e
topology: v6e:2x2x1
jax: 0.10.0
libtpu: 0.0.40
codegen_flags: <defaults>
</compile_context>

<pallas_src>
import math
import jax
import jax.numpy as jnp
import numpy as np
from jax.experimental import pallas as pl
from jax.experimental.pallas import tpu as pltpu

# ---------------- configuration (small, consistent with the module) ----------
B = 2                 # batch
INPLANES = 16         # input channels  (must equal PLANES for the residual add)
PLANES = 16           # output channels
KERNEL = 3            # kernel_size of the Res2Net branch convs
DILATION = 2          # dilation of the Res2Net branch convs
SCALE = 8             # Res2Net scale
T = 16                # sequence length
WIDTH = int(math.floor(PLANES / SCALE))      # = 2
NUMS = SCALE - 1                             # = 7
PAD = (KERNEL // 2) * DILATION               # 'same' padding
BOTTLENECK = 128                             # SEModule bottleneck
EPS = 1e-5

WS = WIDTH * SCALE                           # = 16
KW = KERNEL * WIDTH                          # = 6

# ---- packed matrix slab (wmat) layout: shape (WMAT_ROWS, WMAT_COLS) ----------
C_W1 = 0
C_W3 = C_W1 + WS
C_SE1 = C_W3 + PLANES
C_SE2 = C_SE1 + BOTTLENECK
WMAT_COLS = C_SE2 + PLANES
WMAT_ROWS = max(BOTTLENECK, INPLANES, WS, PLANES)
R_WC = max(INPLANES, WS, PLANES)             # branch-conv weights live below w1
assert R_WC + NUMS * KW <= WMAT_ROWS

# ---- packed vector slab (vecs) layout: shape (VROWS_PAD, VCOLS) --------------
V_B1, V_S1, V_T1 = 0, 1, 2
V_B3, V_S3, V_T3 = 3, 4, 5
V_BSE1 = 6
V_BSE2 = 7
V_BC = 8
V_SC = V_BC + NUMS
V_TC = V_SC + NUMS
VROWS = V_TC + NUMS
VROWS_PAD = ((VROWS + 7) // 8) * 8
VCOLS = max(128, BOTTLENECK)


# ---------------------------- Pallas kernel ----------------------------------
def bottle2neck_kernel(x_ref, wmat_ref, vecs_ref, o_ref):
    nb = x_ref.shape[0]            # batch elements handled by this grid step
    R = nb * T                     # fused (batch*time) sublane extent

    # ---- unpack the packed parameter slabs (static slices) -------------------
    w1 = wmat_ref[:INPLANES, C_W1:C_W1 + WS]
    w3 = wmat_ref[:WS, C_W3:C_W3 + PLANES]
    wse1 = wmat_ref[:PLANES, C_SE1:C_SE1 + BOTTLENECK]
    wse2 = wmat_ref[:BOTTLENECK, C_SE2:C_SE2 + PLANES]
    wcs = wmat_ref[R_WC:R_WC + NUMS * KW, :WIDTH]          # (NUMS*KW, WIDTH)

    b1 = vecs_ref[V_B1:V_B1 + 1, :WS]
    s1 = vecs_ref[V_S1:V_S1 + 1, :WS]
    t1 = vecs_ref[V_T1:V_T1 + 1, :WS]
    b3 = vecs_ref[V_B3:V_B3 + 1, :PLANES]
    s3 = vecs_ref[V_S3:V_S3 + 1, :PLANES]
    t3 = vecs_ref[V_T3:V_T3 + 1, :PLANES]
    bse1 = vecs_ref[V_BSE1:V_BSE1 + 1, :BOTTLENECK]
    bse2 = vecs_ref[V_BSE2:V_BSE2 + 1, :PLANES]
    # per-branch bias / BN rows loaded ONCE, sliced from registers in the loop
    bc_all = vecs_ref[V_BC:V_BC + NUMS, :WIDTH]
    sc_all = vecs_ref[V_SC:V_SC + NUMS, :WIDTH]
    tc_all = vecs_ref[V_TC:V_TC + NUMS, :WIDTH]

    # whole batch stacked along the sublane (time) axis: (nb*T, C)
    x3d = x_ref[...]                                       # (nb, T, C)
    xf = x3d.reshape(R, INPLANES)

    # conv1 (1x1) -> ReLU -> BN1 (eval-mode folded): one matmul for the batch
    out1 = jnp.dot(xf, w1, preferred_element_type=jnp.float32) + b1
    out1 = jnp.maximum(out1, 0.0) * s1 + t1                # (R, WS)

    # dilated 'same'-conv tap offsets and per-sample zero-padding masks
    # (the masks also keep taps from bleeding across the batch seam)
    offs = tuple(k * DILATION - PAD for k in range(KERNEL))
    row_t = jax.lax.broadcasted_iota(jnp.int32, (R, WIDTH), 0) % T
    masks = []
    for off in offs:
        if off == 0:
            masks.append(None)
        else:
            masks.append(jnp.logical_and(row_t + off >= 0, row_t + off < T))

    # Res2Net hierarchical branch convolutions — entirely in registers,
    # run once on the fused (nb*T, ·) view (sequential by construction)
    chunks = []
    sp = None
    for i in range(NUMS):
        spx_i = out1[:, i * WIDTH:(i + 1) * WIDTH]
        sp = spx_i if i == 0 else sp + spx_i
        taps = []
        for k, off in enumerate(offs):
            tap = sp if off == 0 else pltpu.roll(sp, shift=(-off) % R, axis=0)
            if masks[k] is not None:
                tap = jnp.where(masks[k], tap, 0.0)
            taps.append(tap)
        win = jnp.concatenate(taps, axis=1)                # (R, KERNEL*WIDTH)
        conv = jnp.dot(win, wcs[i * KW:(i + 1) * KW, :],
                       preferred_element_type=jnp.float32) + bc_all[i:i + 1]
        sp = jnp.maximum(conv, 0.0) * sc_all[i:i + 1] + tc_all[i:i + 1]
        chunks.append(sp)
    chunks.append(out1[:, NUMS * WIDTH:WS])                # pass-through split
    cat = jnp.concatenate(chunks, axis=1)                  # (R, WS), in registers

    # conv3 (1x1) -> ReLU -> BN3: one matmul for the batch
    out3 = jnp.dot(cat, w3, preferred_element_type=jnp.float32) + b3
    out3 = jnp.maximum(out3, 0.0) * s3 + t3                # (R, PLANES)
    out3_3d = out3.reshape(nb, T, PLANES)

    # SEModule (the BN after the SE ReLU is folded into wse2/bse2 at pack time)
    z = jnp.mean(out3_3d, axis=1)                          # (nb, PLANES)
    h = jnp.dot(z, wse1, preferred_element_type=jnp.float32) + bse1
    h = jnp.maximum(h, 0.0)
    g = jax.nn.sigmoid(jnp.dot(h, wse2, preferred_element_type=jnp.float32)
                       + bse2)                             # (nb, PLANES)

    # gate + residual: single full-block store
    o_ref[...] = (out3_3d * g[:, None, :] + x3d).astype(o_ref.dtype)


# ---------------------------- parameter packing --------------------------------
def pack_params(params):
    (w1, b1, s1, t1, wc, bc, sc, tc,
     w3, b3, s3, t3, wse1, bse1, sse, tse, wse2, bse2) = params

    # fold the SE BatchNorm (sits after a ReLU) into the second SE conv
    wse2f = wse2 * jnp.reshape(sse, (BOTTLENECK, 1))
    bse2f = tse @ wse2 + bse2                                    # (1, PLANES)

    wmat = jnp.zeros((WMAT_ROWS, WMAT_COLS), jnp.float32)
    wmat = wmat.at[:INPLANES, C_W1:C_W1 + WS].set(w1)
    wmat = wmat.at[:WS, C_W3:C_W3 + PLANES].set(w3)
    wmat = wmat.at[:PLANES, C_SE1:C_SE1 + BOTTLENECK].set(wse1)
    wmat = wmat.at[:BOTTLENECK, C_SE2:C_SE2 + PLANES].set(wse2f)
    wmat = wmat.at[R_WC:R_WC + NUMS * KW, :WIDTH].set(wc.reshape(NUMS * KW, WIDTH))

    vecs = jnp.zeros((VROWS_PAD, VCOLS), jnp.float32)
    vecs = vecs.at[V_B1, :WS].set(b1[0])
    vecs = vecs.at[V_S1, :WS].set(s1[0])
    vecs = vecs.at[V_T1, :WS].set(t1[0])
    vecs = vecs.at[V_B3, :PLANES].set(b3[0])
    vecs = vecs.at[V_S3, :PLANES].set(s3[0])
    vecs = vecs.at[V_T3, :PLANES].set(t3[0])
    vecs = vecs.at[V_BSE1, :BOTTLENECK].set(bse1[0])
    vecs = vecs.at[V_BSE2, :PLANES].set(bse2f[0])
    vecs = vecs.at[V_BC:V_BC + NUMS, :WIDTH].set(bc[:, 0, :])
    vecs = vecs.at[V_SC:V_SC + NUMS, :WIDTH].set(sc[:, 0, :])
    vecs = vecs.at[V_TC:V_TC + NUMS, :WIDTH].set(tc[:, 0, :])
    return wmat, vecs


# ---------------------------- wrapper -----------------------------------------
@jax.jit
def bottle2neck_forward(x_bct, wmat, vecs):
    """x_bct: (B, C, T) float32 (PyTorch NCL layout). wmat/vecs: packed params."""
    assert INPLANES == PLANES, "residual add requires inplanes == planes"
    x_btc = jnp.transpose(x_bct, (0, 2, 1))            # -> (B, T, C)

    out = pl.pallas_call(
        bottle2neck_kernel,
        out_shape=jax.ShapeDtypeStruct((B, T, PLANES), jnp.float32),
        grid=(1,),                                     # whole batch fused: one step
        in_specs=[
            pl.BlockSpec((B, T, INPLANES), lambda g: (0, 0, 0)),
            pl.BlockSpec((WMAT_ROWS, WMAT_COLS), lambda g: (0, 0)),
            pl.BlockSpec((VROWS_PAD, VCOLS), lambda g: (0, 0)),
        ],
        out_specs=pl.BlockSpec((B, T, PLANES), lambda g: (0, 0, 0)),
        compiler_params=pltpu.CompilerParams(
            dimension_semantics=("arbitrary",)),
    )(x_btc, wmat, vecs)

    return jnp.transpose(out, (0, 2, 1))                # -> (B, C, T)


# ---------------------------- reference (plain JAX) ----------------------------
def reference_forward(x_bct, params):
    (w1, b1, s1, t1, wc, bc, sc, tc,
     w3, b3, s3, t3, wse1, bse1, sse, tse, wse2, bse2) = params
    x_btc = jnp.transpose(x_bct, (0, 2, 1))

    def single(x):
        out = jnp.maximum(x @ w1 + b1, 0.0) * s1 + t1
        chunks = []
        sp = None
        for i in range(NUMS):
            spx_i = out[:, i * WIDTH:(i + 1) * WIDTH]
            sp = spx_i if i == 0 else sp + spx_i
            spp = jnp.pad(sp, ((PAD, PAD), (0, 0)))
            acc = jnp.zeros((T, WIDTH), jnp.float32)
            for k in range(KERNEL):
                acc = acc + spp[k * DILATION:k * DILATION + T] @ wc[i, k]
            sp = jnp.maximum(acc + bc[i], 0.0) * sc[i] + tc[i]
            chunks.append(sp)
        chunks.append(out[:, NUMS * WIDTH:])
        out = jnp.concatenate(chunks, axis=1)
        out = jnp.maximum(out @ w3 + b3, 0.0) * s3 + t3
        z = jnp.mean(out, axis=0, keepdims=True)
        h = jnp.maximum(z @ wse1 + bse1, 0.0) * sse + tse
        g = jax.nn.sigmoid(h @ wse2 + bse2)
        return out * g + x

    out = jax.vmap(single)(x_btc)
    return jnp.transpose(out, (0, 2, 1))


# ---------------------------- parameter init ----------------------------------
def make_params(key):
    ks = list(jax.random.split(key, 32))
    k = iter(ks)

    def bn_fold(kk, n):
        k1, k2, k3, k4 = jax.random.split(kk, 4)
        gamma = jax.random.uniform(k1, (1, n), jnp.float32, 0.5, 1.5)
        beta = 0.1 * jax.random.normal(k2, (1, n), jnp.float32)
        mean = 0.1 * jax.random.normal(k3, (1, n), jnp.float32)
        var = jax.random.uniform(k4, (1, n), jnp.float32, 0.5, 1.5)
        s = gamma / jnp.sqrt(var + EPS)
        t = beta - mean * s
        return s, t

    w1 = 0.2 * jax.random.normal(next(k), (INPLANES, WS), jnp.float32)   # (in, out)
    b1 = 0.1 * jax.random.normal(next(k), (1, WS), jnp.float32)
    s1, t1 = bn_fold(next(k), WS)

    wc = 0.2 * jax.random.normal(next(k), (NUMS, KERNEL, WIDTH, WIDTH), jnp.float32)
    bc = 0.1 * jax.random.normal(next(k), (NUMS, 1, WIDTH), jnp.float32)
    sc_list, tc_list = [], []
    for _ in range(NUMS):
        s_i, t_i = bn_fold(next(k), WIDTH)
        sc_list.append(s_i)
        tc_list.append(t_i)
    sc = jnp.stack(sc_list, axis=0)            # (NUMS, 1, WIDTH)
    tc = jnp.stack(tc_list, axis=0)

    w3 = 0.2 * jax.random.normal(next(k), (WS, PLANES), jnp.float32)
    b3 = 0.1 * jax.random.normal(next(k), (1, PLANES), jnp.float32)
    s3, t3 = bn_fold(next(k), PLANES)

    wse1 = 0.2 * jax.random.normal(next(k), (PLANES, BOTTLENECK), jnp.float32)
    bse1 = 0.1 * jax.random.normal(next(k), (1, BOTTLENECK), jnp.float32)
    sse, tse = bn_fold(next(k), BOTTLENECK)
    wse2 = 0.2 * jax.random.normal(next(k), (BOTTLENECK, PLANES), jnp.float32)
    bse2 = 0.1 * jax.random.normal(next(k), (1, PLANES), jnp.float32)

    return (w1, b1, s1, t1, wc, bc, sc, tc,
            w3, b3, s3, t3, wse1, bse1, sse, tse, wse2, bse2)


# ---------------------------- main --------------------------------------------
if __name__ == "__main__":
    key = jax.random.PRNGKey(0)
    kx, kp = jax.random.split(key)
    x = jax.random.normal(kx, (B, INPLANES, T), jnp.float32)    # PyTorch (N, C, L) layout
    params = make_params(kp)

    # params are static: pack once, outside the per-call path
    wmat, vecs = pack_params(params)
    wmat = jax.block_until_ready(wmat)
    vecs = jax.block_until_ready(vecs)

    out = jax.block_until_ready(bottle2neck_forward(x, wmat, vecs))
    ref = jax.block_until_ready(reference_forward(x, params))
    np.testing.assert_allclose(np.asarray(out), np.asarray(ref), rtol=1e-3, atol=1e-3)

    assert out.shape == (B, PLANES, T)
    print("KERNEL_OK")
</pallas_src>

<mosaic_0001>
module attributes {stable_mosaic.version = 11 : i64} {
  func.func @bottle2neck_kernel(%arg0: i32, %arg1: memref<2x16x16xf32, #tpu.memory_space<vmem>>, %arg2: memref<128x176xf32, #tpu.memory_space<vmem>>, %arg3: memref<32x128xf32, #tpu.memory_space<vmem>>, %arg4: memref<2x16x16xf32, #tpu.memory_space<vmem>>) attributes {dimension_semantics = [#tpu.dimension_semantics<arbitrary>], iteration_bounds = array<i64: 1>, scalar_prefetch = 0 : i64, scratch_operands = 0 : i64, tpu.core_type = #tpu.core_type<tc>, window_params = [{pipeline_mode = #tpu.pipeline_mode<synchronous>, transform_indices = @transform_0, window_bounds = array<i64: 2, 16, 16>}, {pipeline_mode = #tpu.pipeline_mode<synchronous>, transform_indices = @transform_1, window_bounds = array<i64: 128, 176>}, {pipeline_mode = #tpu.pipeline_mode<synchronous>, transform_indices = @transform_2, window_bounds = array<i64: 32, 128>}, {pipeline_mode = #tpu.pipeline_mode<synchronous>, transform_indices = @transform_3, window_bounds = array<i64: 2, 16, 16>}]} {
    %c0 = arith.constant 0 : index
    %c0_0 = arith.constant 0 : index
    %0 = vector.load %arg2[%c0, %c0_0] : memref<128x176xf32, #tpu.memory_space<vmem>>, vector<16x16xf32>
    %c0_1 = arith.constant 0 : index
    %c16 = arith.constant 16 : index
    %1 = vector.load %arg2[%c0_1, %c16] : memref<128x176xf32, #tpu.memory_space<vmem>>, vector<16x16xf32>
    %c0_2 = arith.constant 0 : index
    %c32 = arith.constant 32 : index
    %2 = vector.load %arg2[%c0_2, %c32] : memref<128x176xf32, #tpu.memory_space<vmem>>, vector<16x128xf32>
    %c0_3 = arith.constant 0 : index
    %c160 = arith.constant 160 : index
    %3 = vector.load %arg2[%c0_3, %c160] : memref<128x176xf32, #tpu.memory_space<vmem>>, vector<128x16xf32>
    %c16_4 = arith.constant 16 : index
    %c0_5 = arith.constant 0 : index
    %4 = vector.load %arg2[%c16_4, %c0_5] : memref<128x176xf32, #tpu.memory_space<vmem>>, vector<42x2xf32>
    %c0_6 = arith.constant 0 : index
    %c0_7 = arith.constant 0 : index
    %5 = vector.load %arg3[%c0_6, %c0_7] : memref<32x128xf32, #tpu.memory_space<vmem>>, vector<1x16xf32>
    %c1 = arith.constant 1 : index
    %c0_8 = arith.constant 0 : index
    %6 = vector.load %arg3[%c1, %c0_8] : memref<32x128xf32, #tpu.memory_space<vmem>>, vector<1x16xf32>
    %c2 = arith.constant 2 : index
    %c0_9 = arith.constant 0 : index
    %7 = vector.load %arg3[%c2, %c0_9] : memref<32x128xf32, #tpu.memory_space<vmem>>, vector<1x16xf32>
    %c3 = arith.constant 3 : index
    %c0_10 = arith.constant 0 : index
    %8 = vector.load %arg3[%c3, %c0_10] : memref<32x128xf32, #tpu.memory_space<vmem>>, vector<1x16xf32>
    %c4 = arith.constant 4 : index
    %c0_11 = arith.constant 0 : index
    %9 = vector.load %arg3[%c4, %c0_11] : memref<32x128xf32, #tpu.memory_space<vmem>>, vector<1x16xf32>
    %c5 = arith.constant 5 : index
    %c0_12 = arith.constant 0 : index
    %10 = vector.load %arg3[%c5, %c0_12] : memref<32x128xf32, #tpu.memory_space<vmem>>, vector<1x16xf32>
    %c6 = arith.constant 6 : index
    %c0_13 = arith.constant 0 : index
    %11 = vector.load %arg3[%c6, %c0_13] : memref<32x128xf32, #tpu.memory_space<vmem>>, vector<1x128xf32>
    %c7 = arith.constant 7 : index
    %c0_14 = arith.constant 0 : index
    %12 = vector.load %arg3[%c7, %c0_14] : memref<32x128xf32, #tpu.memory_space<vmem>>, vector<1x16xf32>
    %c8 = arith.constant 8 : index
    %c0_15 = arith.constant 0 : index
    %13 = vector.load %arg3[%c8, %c0_15] : memref<32x128xf32, #tpu.memory_space<vmem>>, vector<7x2xf32>
    %c15 = arith.constant 15 : index
    %c0_16 = arith.constant 0 : index
    %14 = vector.load %arg3[%c15, %c0_16] : memref<32x128xf32, #tpu.memory_space<vmem>>, vector<7x2xf32>
    %c22 = arith.constant 22 : index
    %c0_17 = arith.constant 0 : index
    %15 = vector.load %arg3[%c22, %c0_17] : memref<32x128xf32, #tpu.memory_space<vmem>>, vector<7x2xf32>
    %c0_18 = arith.constant 0 : index
    %c0_19 = arith.constant 0 : index
    %c0_20 = arith.constant 0 : index
    %16 = vector.load %arg1[%c0_18, %c0_19, %c0_20] : memref<2x16x16xf32, #tpu.memory_space<vmem>>, vector<2x16x16xf32>
    %17 = vector.shape_cast %16 : vector<2x16x16xf32> to vector<32x16xf32>
    %cst = arith.constant dense<0.000000e+00> : vector<32x16xf32>
    %18 = tpu.matmul %17, %0, %cst {dimension_numbers = #tpu.dot_dimension_numbers<[1], [0], [0], [1], [0, 0, 1, 1], [], []>} : vector<32x16xf32>, vector<16x16xf32>, vector<32x16xf32> -> vector<32x16xf32>
    %19 = vector.broadcast %5 : vector<1x16xf32> to vector<32x16xf32>
    %20 = arith.addf %18, %19 : vector<32x16xf32>
    %cst_21 = arith.constant 0.000000e+00 : f32
    %21 = vector.broadcast %cst_21 : f32 to vector<32x16xf32>
    %22 = arith.maximumf %20, %21 : vector<32x16xf32>
    %23 = vector.broadcast %6 : vector<1x16xf32> to vector<32x16xf32>
    %24 = arith.mulf %22, %23 : vector<32x16xf32>
    %25 = vector.broadcast %7 : vector<1x16xf32> to vector<32x16xf32>
    %26 = arith.addf %24, %25 : vector<32x16xf32>
    %27 = tpu.iota {dimensions = array<i32: 0>} : vector<32x2xi32>
    %c16_i32 = arith.constant 16 : i32
    %c0_i32 = arith.constant 0 : i32
    %28 = arith.cmpi eq, %c16_i32, %c0_i32 : i32
    %c1_i32 = arith.constant 1 : i32
    %29 = arith.select %28, %c1_i32, %c16_i32 : i32
    %30 = vector.broadcast %29 : i32 to vector<32x2xi32>
    %31 = arith.remsi %27, %30 : vector<32x2xi32>
    %c0_i32_22 = arith.constant 0 : i32
    %32 = vector.broadcast %c0_i32_22 : i32 to vector<32x2xi32>
    %33 = arith.cmpi ne, %31, %32 : vector<32x2xi32>
    %c0_i32_23 = arith.constant 0 : i32
    %34 = vector.broadcast %c0_i32_23 : i32 to vector<32x2xi32>
    %35 = arith.cmpi slt, %31, %34 : vector<32x2xi32>
    %c0_i32_24 = arith.constant 0 : i32
    %36 = arith.cmpi slt, %29, %c0_i32_24 : i32
    %37 = vector.broadcast %36 : i1 to vector<32x2xi1>
    %38 = vector.broadcast %37 : vector<32x2xi1> to vector<32x2xi1>
    %39 = arith.xori %35, %38 : vector<32x2xi1>
    %40 = arith.andi %39, %33 : vector<32x2xi1>
    %41 = vector.broadcast %29 : i32 to vector<32x2xi32>
    %42 = arith.addi %31, %41 : vector<32x2xi32>
    %43 = arith.select %40, %42, %31 : vector<32x2xi1>, vector<32x2xi32>
    %c-2_i32 = arith.constant -2 : i32
    %44 = vector.broadcast %c-2_i32 : i32 to vector<32x2xi32>
    %45 = arith.addi %43, %44 : vector<32x2xi32>
    %c0_i32_25 = arith.constant 0 : i32
    %46 = vector.broadcast %c0_i32_25 : i32 to vector<32x2xi32>
    %47 = arith.cmpi sge, %45, %46 : vector<32x2xi32>
    %c-2_i32_26 = arith.constant -2 : i32
    %48 = vector.broadcast %c-2_i32_26 : i32 to vector<32x2xi32>
    %49 = arith.addi %43, %48 : vector<32x2xi32>
    %c16_i32_27 = arith.constant 16 : i32
    %50 = vector.broadcast %c16_i32_27 : i32 to vector<32x2xi32>
    %51 = arith.cmpi slt, %49, %50 : vector<32x2xi32>
    %52 = arith.andi %47, %51 : vector<32x2xi1>
    %c2_i32 = arith.constant 2 : i32
    %53 = vector.broadcast %c2_i32 : i32 to vector<32x2xi32>
    %54 = arith.addi %43, %53 : vector<32x2xi32>
    %c0_i32_28 = arith.constant 0 : i32
    %55 = vector.broadcast %c0_i32_28 : i32 to vector<32x2xi32>
    %56 = arith.cmpi sge, %54, %55 : vector<32x2xi32>
    %c2_i32_29 = arith.constant 2 : i32
    %57 = vector.broadcast %c2_i32_29 : i32 to vector<32x2xi32>
    %58 = arith.addi %43, %57 : vector<32x2xi32>
    %c16_i32_30 = arith.constant 16 : i32
    %59 = vector.broadcast %c16_i32_30 : i32 to vector<32x2xi32>
    %60 = arith.cmpi slt, %58, %59 : vector<32x2xi32>
    %61 = arith.andi %56, %60 : vector<32x2xi1>
    %62 = vector.extract_strided_slice %26 {offsets = [0, 0], sizes = [32, 2], strides = [1, 1]} : vector<32x16xf32> to vector<32x2xf32>
    %c2_i32_31 = arith.constant 2 : i32
    %63 = tpu.dynamic_rotate %62 by %c2_i32_31 dim 0 : vector<32x2xf32>, i32 -> vector<32x2xf32>
    %cst_32 = arith.constant 0.000000e+00 : f32
    %64 = vector.broadcast %cst_32 : f32 to vector<32x2xf32>
    %65 = arith.select %52, %63, %64 : vector<32x2xi1>, vector<32x2xf32>
    %c30_i32 = arith.constant 30 : i32
    %66 = tpu.dynamic_rotate %62 by %c30_i32 dim 0 : vector<32x2xf32>, i32 -> vector<32x2xf32>
    %cst_33 = arith.constant 0.000000e+00 : f32
    %67 = vector.broadcast %cst_33 : f32 to vector<32x2xf32>
    %68 = arith.select %61, %66, %67 : vector<32x2xi1>, vector<32x2xf32>
    %69 = tpu.concatenate %65, %62, %68 in 1 : vector<32x2xf32>, vector<32x2xf32>, vector<32x2xf32> -> vector<32x6xf32>
    %70 = vector.extract_strided_slice %4 {offsets = [0, 0], sizes = [6, 2], strides = [1, 1]} : vector<42x2xf32> to vector<6x2xf32>
    %cst_34 = arith.constant dense<0.000000e+00> : vector<32x2xf32>
    %71 = tpu.matmul %69, %70, %cst_34 {dimension_numbers = #tpu.dot_dimension_numbers<[1], [0], [0], [1], [0, 0, 1, 1], [], []>} : vector<32x6xf32>, vector<6x2xf32>, vector<32x2xf32> -> vector<32x2xf32>
    %72 = vector.extract_strided_slice %13 {offsets = [0, 0], sizes = [1, 2], strides = [1, 1]} : vector<7x2xf32> to vector<1x2xf32>
    %73 = vector.broadcast %72 : vector<1x2xf32> to vector<32x2xf32>
    %74 = arith.addf %71, %73 : vector<32x2xf32>
    %cst_35 = arith.constant 0.000000e+00 : f32
    %75 = vector.broadcast %cst_35 : f32 to vector<32x2xf32>
    %76 = arith.maximumf %74, %75 : vector<32x2xf32>
    %77 = vector.extract_strided_slice %14 {offsets = [0, 0], sizes = [1, 2], strides = [1, 1]} : vector<7x2xf32> to vector<1x2xf32>
    %78 = vector.broadcast %77 : vector<1x2xf32> to vector<32x2xf32>
    %79 = arith.mulf %76, %78 : vector<32x2xf32>
    %80 = vector.extract_strided_slice %15 {offsets = [0, 0], sizes = [1, 2], strides = [1, 1]} : vector<7x2xf32> to vector<1x2xf32>
    %81 = vector.broadcast %80 : vector<1x2xf32> to vector<32x2xf32>
    %82 = arith.addf %79, %81 : vector<32x2xf32>
    %83 = vector.extract_strided_slice %26 {offsets = [0, 2], sizes = [32, 2], strides = [1, 1]} : vector<32x16xf32> to vector<32x2xf32>
    %84 = arith.addf %82, %83 : vector<32x2xf32>
    %c2_i32_36 = arith.constant 2 : i32
    %85 = tpu.dynamic_rotate %84 by %c2_i32_36 dim 0 : vector<32x2xf32>, i32 -> vector<32x2xf32>
    %cst_37 = arith.constant 0.000000e+00 : f32
    %86 = vector.broadcast %cst_37 : f32 to vector<32x2xf32>
    %87 = arith.select %52, %85, %86 : vector<32x2xi1>, vector<32x2xf32>
    %c30_i32_38 = arith.constant 30 : i32
    %88 = tpu.dynamic_rotate %84 by %c30_i32_38 dim 0 : vector<32x2xf32>, i32 -> vector<32x2xf32>
    %cst_39 = arith.constant 0.000000e+00 : f32
    %89 = vector.broadcast %cst_39 : f32 to vector<32x2xf32>
    %90 = arith.select %61, %88, %89 : vector<32x2xi1>, vector<32x2xf32>
    %91 = tpu.concatenate %87, %84, %90 in 1 : vector<32x2xf32>, vector<32x2xf32>, vector<32x2xf32> -> vector<32x6xf32>
    %92 = vector.extract_strided_slice %4 {offsets = [6, 0], sizes = [6, 2], strides = [1, 1]} : vector<42x2xf32> to vector<6x2xf32>
    %cst_40 = arith.constant dense<0.000000e+00> : vector<32x2xf32>
    %93 = tpu.matmul %91, %92, %cst_40 {dimension_numbers = #tpu.dot_dimension_numbers<[1], [0], [0], [1], [0, 0, 1, 1], [], []>} : vector<32x6xf32>, vector<6x2xf32>, vector<32x2xf32> -> vector<32x2xf32>
    %94 = vector.extract_strided_slice %13 {offsets = [1, 0], sizes = [1, 2], strides = [1, 1]} : vector<7x2xf32> to vector<1x2xf32>
    %95 = vector.broadcast %94 : vector<1x2xf32> to vector<32x2xf32>
    %96 = arith.addf %93, %95 : vector<32x2xf32>
    %cst_41 = arith.constant 0.000000e+00 : f32
    %97 = vector.broadcast %cst_41 : f32 to vector<32x2xf32>
    %98 = arith.maximumf %96, %97 : vector<32x2xf32>
    %99 = vector.extract_strided_slice %14 {offsets = [1, 0], sizes = [1, 2], strides = [1, 1]} : vector<7x2xf32> to vector<1x2xf32>
    %100 = vector.broadcast %99 : vector<1x2xf32> to vector<32x2xf32>
    %101 = arith.mulf %98, %100 : vector<32x2xf32>
    %102 = vector.extract_strided_slice %15 {offsets = [1, 0], sizes = [1, 2], strides = [1, 1]} : vector<7x2xf32> to vector<1x2xf32>
    %103 = vector.broadcast %102 : vector<1x2xf32> to vector<32x2xf32>
    %104 = arith.addf %101, %103 : vector<32x2xf32>
    %105 = vector.extract_strided_slice %26 {offsets = [0, 4], sizes = [32, 2], strides = [1, 1]} : vector<32x16xf32> to vector<32x2xf32>
    %106 = arith.addf %104, %105 : vector<32x2xf32>
    %c2_i32_42 = arith.constant 2 : i32
    %107 = tpu.dynamic_rotate %106 by %c2_i32_42 dim 0 : vector<32x2xf32>, i32 -> vector<32x2xf32>
    %cst_43 = arith.constant 0.000000e+00 : f32
    %108 = vector.broadcast %cst_43 : f32 to vector<32x2xf32>
    %109 = arith.select %52, %107, %108 : vector<32x2xi1>, vector<32x2xf32>
    %c30_i32_44 = arith.constant 30 : i32
    %110 = tpu.dynamic_rotate %106 by %c30_i32_44 dim 0 : vector<32x2xf32>, i32 -> vector<32x2xf32>
    %cst_45 = arith.constant 0.000000e+00 : f32
    %111 = vector.broadcast %cst_45 : f32 to vector<32x2xf32>
    %112 = arith.select %61, %110, %111 : vector<32x2xi1>, vector<32x2xf32>
    %113 = tpu.concatenate %109, %106, %112 in 1 : vector<32x2xf32>, vector<32x2xf32>, vector<32x2xf32> -> vector<32x6xf32>
    %114 = vector.extract_strided_slice %4 {offsets = [12, 0], sizes = [6, 2], strides = [1, 1]} : vector<42x2xf32> to vector<6x2xf32>
    %cst_46 = arith.constant dense<0.000000e+00> : vector<32x2xf32>
    %115 = tpu.matmul %113, %114, %cst_46 {dimension_numbers = #tpu.dot_dimension_numbers<[1], [0], [0], [1], [0, 0, 1, 1], [], []>} : vector<32x6xf32>, vector<6x2xf32>, vector<32x2xf32> -> vector<32x2xf32>
    %116 = vector.extract_strided_slice %13 {offsets = [2, 0], sizes = [1, 2], strides = [1, 1]} : vector<7x2xf32> to vector<1x2xf32>
    %117 = vector.broadcast %116 : vector<1x2xf32> to vector<32x2xf32>
    %118 = arith.addf %115, %117 : vector<32x2xf32>
    %cst_47 = arith.constant 0.000000e+00 : f32
    %119 = vector.broadcast %cst_47 : f32 to vector<32x2xf32>
    %120 = arith.maximumf %118, %119 : vector<32x2xf32>
    %121 = vector.extract_strided_slice %14 {offsets = [2, 0], sizes = [1, 2], strides = [1, 1]} : vector<7x2xf32> to vector<1x2xf32>
    %122 = vector.broadcast %121 : vector<1x2xf32> to vector<32x2xf32>
    %123 = arith.mulf %120, %122 : vector<32x2xf32>
    %124 = vector.extract_strided_slice %15 {offsets = [2, 0], sizes = [1, 2], strides = [1, 1]} : vector<7x2xf32> to vector<1x2xf32>
    %125 = vector.broadcast %124 : vector<1x2xf32> to vector<32x2xf32>
    %126 = arith.addf %123, %125 : vector<32x2xf32>
    %127 = vector.extract_strided_slice %26 {offsets = [0, 6], sizes = [32, 2], strides = [1, 1]} : vector<32x16xf32> to vector<32x2xf32>
    %128 = arith.addf %126, %127 : vector<32x2xf32>
    %c2_i32_48 = arith.constant 2 : i32
    %129 = tpu.dynamic_rotate %128 by %c2_i32_48 dim 0 : vector<32x2xf32>, i32 -> vector<32x2xf32>
    %cst_49 = arith.constant 0.000000e+00 : f32
    %130 = vector.broadcast %cst_49 : f32 to vector<32x2xf32>
    %131 = arith.select %52, %129, %130 : vector<32x2xi1>, vector<32x2xf32>
    %c30_i32_50 = arith.constant 30 : i32
    %132 = tpu.dynamic_rotate %128 by %c30_i32_50 dim 0 : vector<32x2xf32>, i32 -> vector<32x2xf32>
    %cst_51 = arith.constant 0.000000e+00 : f32
    %133 = vector.broadcast %cst_51 : f32 to vector<32x2xf32>
    %134 = arith.select %61, %132, %133 : vector<32x2xi1>, vector<32x2xf32>
    %135 = tpu.concatenate %131, %128, %134 in 1 : vector<32x2xf32>, vector<32x2xf32>, vector<32x2xf32> -> vector<32x6xf32>
    %136 = vector.extract_strided_slice %4 {offsets = [18, 0], sizes = [6, 2], strides = [1, 1]} : vector<42x2xf32> to vector<6x2xf32>
    %cst_52 = arith.constant dense<0.000000e+00> : vector<32x2xf32>
    %137 = tpu.matmul %135, %136, %cst_52 {dimension_numbers = #tpu.dot_dimension_numbers<[1], [0], [0], [1], [0, 0, 1, 1], [], []>} : vector<32x6xf32>, vector<6x2xf32>, vector<32x2xf32> -> vector<32x2xf32>
    %138 = vector.extract_strided_slice %13 {offsets = [3, 0], sizes = [1, 2], strides = [1, 1]} : vector<7x2xf32> to vector<1x2xf32>
    %139 = vector.broadcast %138 : vector<1x2xf32> to vector<32x2xf32>
    %140 = arith.addf %137, %139 : vector<32x2xf32>
    %cst_53 = arith.constant 0.000000e+00 : f32
    %141 = vector.broadcast %cst_53 : f32 to vector<32x2xf32>
    %142 = arith.maximumf %140, %141 : vector<32x2xf32>
    %143 = vector.extract_strided_slice %14 {offsets = [3, 0], sizes = [1, 2], strides = [1, 1]} : vector<7x2xf32> to vector<1x2xf32>
    %144 = vector.broadcast %143 : vector<1x2xf32> to vector<32x2xf32>
    %145 = arith.mulf %142, %144 : vector<32x2xf32>
    %146 = vector.extract_strided_slice %15 {offsets = [3, 0], sizes = [1, 2], strides = [1, 1]} : vector<7x2xf32> to vector<1x2xf32>
    %147 = vector.broadcast %146 : vector<1x2xf32> to vector<32x2xf32>
    %148 = arith.addf %145, %147 : vector<32x2xf32>
    %149 = vector.extract_strided_slice %26 {offsets = [0, 8], sizes = [32, 2], strides = [1, 1]} : vector<32x16xf32> to vector<32x2xf32>
    %150 = arith.addf %148, %149 : vector<32x2xf32>
    %c2_i32_54 = arith.constant 2 : i32
    %151 = tpu.dynamic_rotate %150 by %c2_i32_54 dim 0 : vector<32x2xf32>, i32 -> vector<32x2xf32>
    %cst_55 = arith.constant 0.000000e+00 : f32
    %152 = vector.broadcast %cst_55 : f32 to vector<32x2xf32>
    %153 = arith.select %52, %151, %152 : vector<32x2xi1>, vector<32x2xf32>
    %c30_i32_56 = arith.constant 30 : i32
    %154 = tpu.dynamic_rotate %150 by %c30_i32_56 dim 0 : vector<32x2xf32>, i32 -> vector<32x2xf32>
    %cst_57 = arith.constant 0.000000e+00 : f32
    %155 = vector.broadcast %cst_57 : f32 to vector<32x2xf32>
    %156 = arith.select %61, %154, %155 : vector<32x2xi1>, vector<32x2xf32>
    %157 = tpu.concatenate %153, %150, %156 in 1 : vector<32x2xf32>, vector<32x2xf32>, vector<32x2xf32> -> vector<32x6xf32>
    %158 = vector.extract_strided_slice %4 {offsets = [24, 0], sizes = [6, 2], strides = [1, 1]} : vector<42x2xf32> to vector<6x2xf32>
    %cst_58 = arith.constant dense<0.000000e+00> : vector<32x2xf32>
    %159 = tpu.matmul %157, %158, %cst_58 {dimension_numbers = #tpu.dot_dimension_numbers<[1], [0], [0], [1], [0, 0, 1, 1], [], []>} : vector<32x6xf32>, vector<6x2xf32>, vector<32x2xf32> -> vector<32x2xf32>
    %160 = vector.extract_strided_slice %13 {offsets = [4, 0], sizes = [1, 2], strides = [1, 1]} : vector<7x2xf32> to vector<1x2xf32>
    %161 = vector.broadcast %160 : vector<1x2xf32> to vector<32x2xf32>
    %162 = arith.addf %159, %161 : vector<32x2xf32>
    %cst_59 = arith.constant 0.000000e+00 : f32
    %163 = vector.broadcast %cst_59 : f32 to vector<32x2xf32>
    %164 = arith.maximumf %162, %163 : vector<32x2xf32>
    %165 = vector.extract_strided_slice %14 {offsets = [4, 0], sizes = [1, 2], strides = [1, 1]} : vector<7x2xf32> to vector<1x2xf32>
    %166 = vector.broadcast %165 : vector<1x2xf32> to vector<32x2xf32>
    %167 = arith.mulf %164, %166 : vector<32x2xf32>
    %168 = vector.extract_strided_slice %15 {offsets = [4, 0], sizes = [1, 2], strides = [1, 1]} : vector<7x2xf32> to vector<1x2xf32>
    %169 = vector.broadcast %168 : vector<1x2xf32> to vector<32x2xf32>
    %170 = arith.addf %167, %169 : vector<32x2xf32>
    %171 = vector.extract_strided_slice %26 {offsets = [0, 10], sizes = [32, 2], strides = [1, 1]} : vector<32x16xf32> to vector<32x2xf32>
    %172 = arith.addf %170, %171 : vector<32x2xf32>
    %c2_i32_60 = arith.constant 2 : i32
    %173 = tpu.dynamic_rotate %172 by %c2_i32_60 dim 0 : vector<32x2xf32>, i32 -> vector<32x2xf32>
    %cst_61 = arith.constant 0.000000e+00 : f32
    %174 = vector.broadcast %cst_61 : f32 to vector<32x2xf32>
    %175 = arith.select %52, %173, %174 : vector<32x2xi1>, vector<32x2xf32>
    %c30_i32_62 = arith.constant 30 : i32
    %176 = tpu.dynamic_rotate %172 by %c30_i32_62 dim 0 : vector<32x2xf32>, i32 -> vector<32x2xf32>
    %cst_63 = arith.constant 0.000000e+00 : f32
    %177 = vector.broadcast %cst_63 : f32 to vector<32x2xf32>
    %178 = arith.select %61, %176, %177 : vector<32x2xi1>, vector<32x2xf32>
    %179 = tpu.concatenate %175, %172, %178 in 1 : vector<32x2xf32>, vector<32x2xf32>, vector<32x2xf32> -> vector<32x6xf32>
    %180 = vector.extract_strided_slice %4 {offsets = [30, 0], sizes = [6, 2], strides = [1, 1]} : vector<42x2xf32> to vector<6x2xf32>
    %cst_64 = arith.constant dense<0.000000e+00> : vector<32x2xf32>
    %181 = tpu.matmul %179, %180, %cst_64 {dimension_numbers = #tpu.dot_dimension_numbers<[1], [0], [0], [1], [0, 0, 1, 1], [], []>} : vector<32x6xf32>, vector<6x2xf32>, vector<32x2xf32> -> vector<32x2xf32>
    %182 = vector.extract_strided_slice %13 {offsets = [5, 0], sizes = [1, 2], strides = [1, 1]} : vector<7x2xf32> to vector<1x2xf32>
    %183 = vector.broadcast %182 : vector<1x2xf32> to vector<32x2xf32>
    %184 = arith.addf %181, %183 : vector<32x2xf32>
    %cst_65 = arith.constant 0.000000e+00 : f32
    %185 = vector.broadcast %cst_65 : f32 to vector<32x2xf32>
    %186 = arith.maximumf %184, %185 : vector<32x2xf32>
    %187 = vector.extract_strided_slice %14 {offsets = [5, 0], sizes = [1, 2], strides = [1, 1]} : vector<7x2xf32> to vector<1x2xf32>
    %188 = vector.broadcast %187 : vector<1x2xf32> to vector<32x2xf32>
    %189 = arith.mulf %186, %188 : vector<32x2xf32>
    %190 = vector.extract_strided_slice %15 {offsets = [5, 0], sizes = [1, 2], strides = [1, 1]} : vector<7x2xf32> to vector<1x2xf32>
    %191 = vector.broadcast %190 : vector<1x2xf32> to vector<32x2xf32>
    %192 = arith.addf %189, %191 : vector<32x2xf32>
    %193 = vector.extract_strided_slice %26 {offsets = [0, 12], sizes = [32, 2], strides = [1, 1]} : vector<32x16xf32> to vector<32x2xf32>
    %194 = arith.addf %192, %193 : vector<32x2xf32>
    %c2_i32_66 = arith.constant 2 : i32
    %195 = tpu.dynamic_rotate %194 by %c2_i32_66 dim 0 : vector<32x2xf32>, i32 -> vector<32x2xf32>
    %cst_67 = arith.constant 0.000000e+00 : f32
    %196 = vector.broadcast %cst_67 : f32 to vector<32x2xf32>
    %197 = arith.select %52, %195, %196 : vector<32x2xi1>, vector<32x2xf32>
    %c30_i32_68 = arith.constant 30 : i32
    %198 = tpu.dynamic_rotate %194 by %c30_i32_68 dim 0 : vector<32x2xf32>, i32 -> vector<32x2xf32>
    %cst_69 = arith.constant 0.000000e+00 : f32
    %199 = vector.broadcast %cst_69 : f32 to vector<32x2xf32>
    %200 = arith.select %61, %198, %199 : vector<32x2xi1>, vector<32x2xf32>
    %201 = tpu.concatenate %197, %194, %200 in 1 : vector<32x2xf32>, vector<32x2xf32>, vector<32x2xf32> -> vector<32x6xf32>
    %202 = vector.extract_strided_slice %4 {offsets = [36, 0], sizes = [6, 2], strides = [1, 1]} : vector<42x2xf32> to vector<6x2xf32>
    %cst_70 = arith.constant dense<0.000000e+00> : vector<32x2xf32>
    %203 = tpu.matmul %201, %202, %cst_70 {dimension_numbers = #tpu.dot_dimension_numbers<[1], [0], [0], [1], [0, 0, 1, 1], [], []>} : vector<32x6xf32>, vector<6x2xf32>, vector<32x2xf32> -> vector<32x2xf32>
    %204 = vector.extract_strided_slice %13 {offsets = [6, 0], sizes = [1, 2], strides = [1, 1]} : vector<7x2xf32> to vector<1x2xf32>
    %205 = vector.broadcast %204 : vector<1x2xf32> to vector<32x2xf32>
    %206 = arith.addf %203, %205 : vector<32x2xf32>
    %cst_71 = arith.constant 0.000000e+00 : f32
    %207 = vector.broadcast %cst_71 : f32 to vector<32x2xf32>
    %208 = arith.maximumf %206, %207 : vector<32x2xf32>
    %209 = vector.extract_strided_slice %14 {offsets = [6, 0], sizes = [1, 2], strides = [1, 1]} : vector<7x2xf32> to vector<1x2xf32>
    %210 = vector.broadcast %209 : vector<1x2xf32> to vector<32x2xf32>
    %211 = arith.mulf %208, %210 : vector<32x2xf32>
    %212 = vector.extract_strided_slice %15 {offsets = [6, 0], sizes = [1, 2], strides = [1, 1]} : vector<7x2xf32> to vector<1x2xf32>
    %213 = vector.broadcast %212 : vector<1x2xf32> to vector<32x2xf32>
    %214 = arith.addf %211, %213 : vector<32x2xf32>
    %215 = vector.extract_strided_slice %26 {offsets = [0, 14], sizes = [32, 2], strides = [1, 1]} : vector<32x16xf32> to vector<32x2xf32>
    %216 = tpu.concatenate %82, %104, %126, %148, %170, %192, %214, %215 in 1 : vector<32x2xf32>, vector<32x2xf32>, vector<32x2xf32>, vector<32x2xf32>, vector<32x2xf32>, vector<32x2xf32>, vector<32x2xf32>, vector<32x2xf32> -> vector<32x16xf32>
    %cst_72 = arith.constant dense<0.000000e+00> : vector<32x16xf32>
    %217 = tpu.matmul %216, %1, %cst_72 {dimension_numbers = #tpu.dot_dimension_numbers<[1], [0], [0], [1], [0, 0, 1, 1], [], []>} : vector<32x16xf32>, vector<16x16xf32>, vector<32x16xf32> -> vector<32x16xf32>
    %218 = vector.broadcast %8 : vector<1x16xf32> to vector<32x16xf32>
    %219 = arith.addf %217, %218 : vector<32x16xf32>
    %cst_73 = arith.constant 0.000000e+00 : f32
    %220 = vector.broadcast %cst_73 : f32 to vector<32x16xf32>
    %221 = arith.maximumf %219, %220 : vector<32x16xf32>
    %222 = vector.broadcast %9 : vector<1x16xf32> to vector<32x16xf32>
    %223 = arith.mulf %221, %222 : vector<32x16xf32>
    %224 = vector.broadcast %10 : vector<1x16xf32> to vector<32x16xf32>
    %225 = arith.addf %223, %224 : vector<32x16xf32>
    %226 = vector.shape_cast %225 : vector<32x16xf32> to vector<2x16x16xf32>
    %cst_74 = arith.constant dense<0.000000e+00> : vector<2x16xf32>
    %227 = vector.multi_reduction <add>, %226, %cst_74 [1] : vector<2x16x16xf32> to vector<2x16xf32>
    %cst_75 = arith.constant 1.600000e+01 : f32
    %228 = vector.broadcast %cst_75 : f32 to vector<2x16xf32>
    %229 = arith.divf %227, %228 : vector<2x16xf32>
    %cst_76 = arith.constant dense<0.000000e+00> : vector<2x128xf32>
    %230 = tpu.matmul %229, %2, %cst_76 {dimension_numbers = #tpu.dot_dimension_numbers<[1], [0], [0], [1], [0, 0, 1, 1], [], []>} : vector<2x16xf32>, vector<16x128xf32>, vector<2x128xf32> -> vector<2x128xf32>
    %231 = vector.broadcast %11 : vector<1x128xf32> to vector<2x128xf32>
    %232 = arith.addf %230, %231 : vector<2x128xf32>
    %cst_77 = arith.constant 0.000000e+00 : f32
    %233 = vector.broadcast %cst_77 : f32 to vector<2x128xf32>
    %234 = arith.maximumf %232, %233 : vector<2x128xf32>
    %cst_78 = arith.constant dense<0.000000e+00> : vector<2x16xf32>
    %235 = tpu.matmul %234, %3, %cst_78 {dimension_numbers = #tpu.dot_dimension_numbers<[1], [0], [0], [1], [0, 0, 1, 1], [], []>} : vector<2x128xf32>, vector<128x16xf32>, vector<2x16xf32> -> vector<2x16xf32>
    %236 = vector.broadcast %12 : vector<1x16xf32> to vector<2x16xf32>
    %237 = arith.addf %235, %236 : vector<2x16xf32>
    %238 = arith.negf %237 : vector<2x16xf32>
    %239 = math.exp %238 : vector<2x16xf32>
    %cst_79 = arith.constant 1.000000e+00 : f32
    %240 = vector.broadcast %cst_79 : f32 to vector<2x16xf32>
    %241 = arith.addf %240, %239 : vector<2x16xf32>
    %242 = arith.divf %240, %241 : vector<2x16xf32>
    %243 = vector.shape_cast %242 : vector<2x16xf32> to vector<2x1x16xf32>
    %244 = vector.broadcast %243 : vector<2x1x16xf32> to vector<2x16x16xf32>
    %245 = arith.mulf %226, %244 : vector<2x16x16xf32>
    %246 = arith.addf %245, %16 : vector<2x16x16xf32>
    %c0_80 = arith.constant 0 : index
    %c0_81 = arith.constant 0 : index
    %c0_82 = arith.constant 0 : index
    %247 = vector.load %arg4[%c0_80, %c0_81, %c0_82] : memref<2x16x16xf32, #tpu.memory_space<vmem>>, vector<2x16x16xf32>
    tpu.vector_store %arg4[%c0_80, %c0_81, %c0_82], %246 {strides = array<i32>} : memref<2x16x16xf32, #tpu.memory_space<vmem>>, vector<2x16x16xf32>,
    return
  }
  func.func @transform_0(%arg0: i32) -> (i32, i32, i32) {
    %c0_i32 = arith.constant 0 : i32
    %c0_i32_0 = arith.constant 0 : i32
    %c0_i32_1 = arith.constant 0 : i32
    %c0_i32_2 = arith.constant 0 : i32
    return %c0_i32, %c0_i32_0, %c0_i32_1 : i32, i32, i32
  }
  func.func @transform_1(%arg0: i32) -> (i32, i32) {
    %c0_i32 = arith.constant 0 : i32
    %c0_i32_0 = arith.constant 0 : i32
    %c0_i32_1 = arith.constant 0 : i32
    return %c0_i32, %c0_i32_0 : i32, i32
  }
  func.func @transform_2(%arg0: i32) -> (i32, i32) {
    %c0_i32 = arith.constant 0 : i32
    %c0_i32_0 = arith.constant 0 : i32
    %c0_i32_1 = arith.constant 0 : i32
    return %c0_i32, %c0_i32_0 : i32, i32
  }
  func.func @transform_3(%arg0: i32) -> (i32, i32, i32) {
    %c0_i32 = arith.constant 0 : i32
    %c0_i32_0 = arith.constant 0 : i32
    %c0_i32_1 = arith.constant 0 : i32
    %c0_i32_2 = arith.constant 0 : i32
    return %c0_i32, %c0_i32_0, %c0_i32_1 : i32, i32, i32
  }
}

</mosaic_0001>

<bundles_post_ra>
// kernel: bottle2neck_forward.1
= control target key start
LH: loop header
LB: loop body
LE: loop exit
PB: predicated region body
PF: predicated region fallthrough
CT: control target
= control target key end

     0   :  { %vm57_vm0 = vcmask 130048   ;;  %v175_v7 = vlaneseq  ;;  %vm345_vm1 = vcmask 1045504   ;;  %s2521_s5 = smov 2   ;;  %s2522_s6 = smov 4   ;;  %vm323_vm7 = vcmask 31744   ;;  %s3366_s1 = inlined_call_operand.vmem [shape: f32[128,176], index: 1, kind: input, shape index: {}]   ;;  %s3367_s0 = inlined_call_operand.vmem [shape: f32[2,16,16], index: 0, kind: input, shape index: {}]   ;;  %s3368_s2 = inlined_call_operand.vmem [shape: f32[32,128], index: 2, kind: input, shape index: {}]   ;;  %s3369_s3 = inlined_call_operand.vmem [shape: f32[2,16,16], index: 3, kind: output, shape index: {}]  }
   0x1   :  { %v15_v0 = vld [vmem:[%s3366_s1 + $0x10] sm:$0xff]  ;;  %v14_v1 = vld [vmem:[%s3366_s1] sm:$0xff]  ;;  %v50_v3 = vld [vmem:[%s3367_s0 + $0x8] sm:$0xff]  ;;  %s2523_s7 = smov 126   ;;  %vm318_vm8 = vcmask 15360   ;;  %vm332_vm9 = vcmask 48128  }
   0x2   :  { %v49_v2 = vld [vmem:[%s3367_s0] sm:$0xff]  ;;  %2373 = vmatprep.subr.mxu0 %v15_v0  ;;  %v51_v4 = vld [vmem:[%s3367_s0 + $0x10] sm:$0xff]  ;;  %v52_v5 = vld [vmem:[%s3367_s0 + $0x18] sm:$0xff]  ;;  %v2595_v15 = vshrl.u32 %v175_v7, 7  ;;  %vm539_vm11 = vcmask 1041408   ;;  %s2524_s16 = smov 124  }
   0x3   :  { %2377 = vmatprep.mubr.msk.f32.mxu0 %vm57_vm0, %v49_v2  ;;  %2374 = vmatpush3.msra.mxu0 %v15_v0  ;;  %v2253_v6 = vld [vmem:[%s3368_s2] ss:$0 sm:$0xff]  ;;  %v2258_v11 = vld [vmem:[%s3368_s2 + $0x1] ss:$0 sm:$0xff]  ;;  %v2259_v16 = vld [vmem:[%s3368_s2 + $0x2] ss:$0 sm:$0xff] }
   0x4   :  { %2375 = vmatprep.subr.mxu0 %v14_v1  ;;  %v2586_v9 = vld [vmem:[%s3366_s1 + $0x20] sm:$0xff]  ;;  %v177_v21 = vadd.s32 8, %v2595_v15  ;;  %v179_v27 = vadd.s32 24, %v2595_v15  ;;  %vm277_vm2 = vcmp.lt.s32.totalorder %v2595_v15, 6  ;;  %v184_v48 = vand.u32 15, %v2595_v15  ;;  %s2525_s19 = smov 122  }
   0x5   :  { %2376 = vmatpush3.msra.mxu0 %v14_v1  ;;  %v178_v49 = vadd.s32 16, %v2595_v15  ;;  %vm264_vm5 = vcmp.lt.s32.totalorder %v2595_v15, 2  ;;  %vm747_vm12 = vcmask 1043456   ;;  %s2526_s20 = smov 120   ;;  %s2527_s23 = smov 118   ;;  %vm1800_vm13 = vcmask 64512  }
   0x6   :  { %2378 = vmatmul.mubr.msk.f32.vlgmr.msra.gmra.mxu0 %vm57_vm0, %v50_v3  ;;  %2383 = vmatprep.subr.msk.mxu0 %vm345_vm1, %v2586_v9  ;;  %v191_v31 = vand.u32 15, %v177_v21  ;;  %v205_v37 = vand.u32 15, %v179_v27  ;;  %v2652_v52 = vadd.s32 4294967294, %v184_v48  ;;  %v540_v21 = vrot.slane %v2586_v9, 6  ;;  %s2528_s26 = smov 116   ;;  %s2529_s29 = smov 6  }
   0x7   :  { %2380 = vmatprep.mubr.msk.f32.mxu0 %vm57_vm0, %v51_v4  ;;  %2384 = vmatpush3.msk.msra.mxu0 %vm345_vm1, %v2586_v9  ;;  %v198_v53 = vand.u32 15, %v178_v49  ;;  %s2530_s30 = smov 8   ;;  %s2531_s4 = smov 10   ;;  %vm1805_vm14 = vcmask 80896   ;;  %vm1810_vm15 = vcmask 97280  }
   0x8   :  { %v2618_v36 = vadd.s32 2, %v191_v31  ;;  %v2631_v43 = vadd.s32 2, %v205_v37  ;;  %vm232_vm6 = vcmp.ge.s32.totalorder %v2652_v52, 0  ;;  %s2532_s9 = smov 112  }
   0x9   :  { %v2660_v59 = vadd.s32 4294967294, %v198_v53 }
   0xa   :  { %2381 = vmatmul.mubr.msk.f32.gmra.mxu0 %vm57_vm0, %v52_v5  ;;  %vm253_vm3 = vcmp.lt.s32.totalorder %v2618_v36, 16  ;;  %vm255_vm4 = vcmp.lt.s32.totalorder %v2631_v43, 16  ;;  %v3124_v36 = vld [vmem:[%s3366_s1 + $0x10] sm:$0xff]  ;;  %v3137_v43 = vld [vmem:[%s3366_s1] sm:$0xff] }
   0xb   :  { %vm234_vm10 = vcmp.ge.s32.totalorder %v2660_v59, 0 }
  0xc6   :  { %v2379_v8 = vpop.f32.mrf.mxu0 }
  0xc7   :  { %v142_v10 = vadd.f32 %v2379_v8, %v2253_v6 }
  0xc8   :  { %v136_v12 = vpop.f32.mrf.mxu0 }
  0xc9   :  { %v156_v13 = vmax.f32 %v142_v10, 0.0  ;;  %v137_v14 = vadd.f32 %v2253_v6, %v136_v12 }
  0xca   :  { %v2382_v17 = vpop.f32.mrf.mxu0 }
  0xcb   :  { %v164_v18 = vmul.f32 %v2258_v11, %v156_v13  ;;  %v155_v19 = vmax.f32 %v137_v14, 0.0  ;;  %v152_v20 = vadd.f32 %v2382_v17, %v2253_v6  ;;  %v2687_v17 = vsub.s32 0, %v2595_v15 }
  0xcc   :  { %v146_v22 = vpop.f32.mrf.mxu0 }
  0xcd   :  { %v2601_v23 = vadd.f32 %v2259_v16, %v164_v18  ;;  %v163_v24 = vmul.f32 %v2258_v11, %v155_v19  ;;  %v158_v25 = vmax.f32 %v152_v20, 0.0  ;;  %v147_v26 = vadd.f32 %v2253_v6, %v146_v22  ;;  %v2692_v18 = vld [vmem:[%s3368_s2 + $0x8] sm:$0x7f]  ;;  %v2699_v20 = vld [vmem:[%s3368_s2 + $0xf] sm:$0x7f] }
  0xce   :  { %v331_v19 = vrot.slane %v2692_v18, %v2687_v17  ;;  %v2705_v22 = vld [vmem:[%s3368_s2 + $0x16] sm:$0x7f]  ;;  %v441_v27 = vrot.slane %v2699_v20, %v2687_v17 }
  0xcf   :  { %v2604_v28 = vadd.f32 %v2259_v16, %v163_v24  ;;  %v166_v29 = vmul.f32 %v2258_v11, %v158_v25  ;;  %v157_v30 = vmax.f32 %v147_v26, 0.0  ;;  %292 = vrot.lane.b32.xlu0 %v2601_v23, %s2521_s5  ;;  %v274_v38 = vrot.slane %v2601_v23, 2  ;;  %v2710_v25 = vld [vmem:[%s3366_s1 + $0x30] sm:$0xff] }
  0xd0   :  { %v261_v60 = vrot.slane %v2601_v23, 6  ;;  %v449_v31 = vrot.slane %v2705_v22, %v2687_v17 }
  0xd1   :  { %v2608_v32 = vadd.f32 %v2259_v16, %v166_v29  ;;  %v165_v33 = vmul.f32 %v2258_v11, %v157_v30  ;;  %v273_v34 = vrot.slane %v2604_v28, 2  ;;  %v260_v54 = vrot.slane %v2604_v28, 6 }
  0xd2   :  { %v541_v29 = vrot.slane %v2710_v25, 6 }
  0xd3   :  { %v2611_v35 = vadd.f32 %v2259_v16, %v165_v33  ;;  %296 = vrot.lane.b32.xlu1 %v2608_v32, %s2521_s5  ;;  %290 = vrot.lane.b32.xlu0 %v2604_v28, %s2521_s5  ;;  %v280_v40 = vsel %vm277_vm2, %v273_v34, %v274_v38  ;;  %v276_v41 = vrot.slane %v2608_v32, 2  ;;  %v263_v51 = vrot.slane %v2608_v32, 6 }
  0xd4   :  { %v267_v3 = vsel %vm264_vm5, %v260_v54, %v261_v60 }
  0xd5   :  { %v275_v39 = vrot.slane %v2611_v35, 2  ;;  %v281_v46 = vsel %vm277_vm2, %v276_v41, %v273_v34  ;;  %v262_v56 = vrot.slane %v2611_v35, 6  ;;  %v268_v58 = vsel %vm264_vm5, %v263_v51, %v260_v54 }
  0xd6   :  { %v285_v47 = vsel %vm255_vm4, %v281_v46, 0.0  ;;  %v269_v61 = vsel %vm232_vm6, %v268_v58, 0.0  ;;  %v542_v34 = vsel %vm539_vm11, %v540_v21, %v541_v29 }
  0xd7   :  { %294 = vrot.lane.b32.xlu0 %v2611_v35, %s2521_s5  ;;  %306 = vrot.lane.b32.xlu1 %v280_v40, %s2522_s6  ;;  %v279_v42 = vsel %vm277_vm2, %v274_v38, %v275_v39  ;;  %v278_v44 = vsel %vm277_vm2, %v275_v39, %v276_v41  ;;  %v266_v63 = vsel %vm264_vm5, %v261_v60, %v262_v56 }
  0xd8   :  { %v283_v45 = vsel %vm253_vm3, %v279_v42, 0.0  ;;  %v271_v4 = vsel %vm234_vm10, %v266_v63, 0.0  ;;  %v265_v12 = vsel %vm264_vm5, %v262_v56, %v263_v51  ;;  %2391 = vmatprep.subr.msk.mxu0 %vm345_vm1, %v542_v34 }
  0xdb   :  { %310 = vrot.lane.b32.xlu0 %v278_v44, %s2522_s6  ;;  %308 = vrot.lane.b32.xlu1 %v283_v45, %s2522_s6 }
  0xdf   :  { %454 = vrot.lane.b32.xlu0 %v2604_v28, %s2523_s7  ;;  %312 = vrot.lane.b32.xlu1 %v285_v47, %s2522_s6 }
  0xe3   :  { %458 = vrot.lane.b32.xlu0 %v2611_v35, %s2523_s7  ;;  %456 = vrot.lane.b32.xlu1 %v2601_v23, %s2523_s7 }
  0xe7   :  { %460 = vrot.lane.b32.xlu1 %v2608_v32, %s2523_s7 }
 0x141   :  { %v293_v50 = vpop.permute.xlu0 %292 }
 0x142   :  { %v320_v5 = vsel %vm318_vm8, %v267_v3, %v293_v50 }
 0x145   :  { %v297_v55 = vpop.permute.xlu1 %296  ;;  %v291_v57 = vpop.permute.xlu0 %290 }
 0x146   :  { %v319_v62 = vsel %vm318_vm8, %v269_v61, %v291_v57  ;;  %v322_v13 = vsel %vm318_vm8, %v265_v12, %v297_v55 }
 0x149   :  { %v295_v0 = vpop.permute.xlu0 %294  ;;  %v307_v1 = vpop.permute.xlu1 %306 }
 0x14a   :  { %v324_v2 = vsel %vm323_vm7, %v319_v62, %v307_v1  ;;  %v321_v6 = vsel %vm318_vm8, %v271_v4, %v295_v0 }
 0x14b   :  { %2385 = vmatprep.mubr.msk.f32.mxu0 %vm332_vm9, %v324_v2 }
 0x14d   :  { %v311_v7 = vpop.permute.xlu0 %310  ;;  %v309_v8 = vpop.permute.xlu1 %308 }
 0x14e   :  { %v326_v10 = vsel %vm323_vm7, %v321_v6, %v311_v7  ;;  %v325_v11 = vsel %vm323_vm7, %v320_v5, %v309_v8 }
 0x14f   :  { %2386 = vmatmul.mubr.msk.f32.vlgmr.msra.gmra.mxu0 %vm332_vm9, %v325_v11 }
 0x150   :  { %2388 = vmatprep.mubr.msk.f32.mxu0 %vm332_vm9, %v326_v10  ;;  %2392 = vmatpush3.msk.msra.mxu0 %vm345_vm1, %v542_v34 }
 0x151   :  { %v313_v14 = vpop.permute.xlu1 %312  ;;  %v455_v48 = vpop.permute.xlu0 %454 }
 0x152   :  { %v327_v16 = vsel %vm323_vm7, %v322_v13, %v313_v14 }
 0x153   :  { %2389 = vmatmul.mubr.msk.f32.gmra.mxu0 %vm332_vm9, %v327_v16 }
 0x155   :  { %v457_v41 = vpop.permute.xlu1 %456  ;;  %v459_v0 = vpop.permute.xlu0 %458 }
 0x159   :  { %v461_v57 = vpop.permute.xlu1 %460 }
 0x20f   :  { %v2387_v24 = vpop.f32.mrf.mxu0 }
 0x210   :  { %v421_v26 = vadd.f32 %v2387_v24, %v331_v19 }
 0x211   :  { %v415_v30 = vpop.f32.mrf.mxu0 }
 0x212   :  { %v435_v9 = vmax.f32 %v421_v26, 0.0  ;;  %v416_v33 = vadd.f32 %v415_v30, %v331_v19 }
 0x213   :  { %v2390_v37 = vpop.f32.mrf.mxu0 }
 0x214   :  { %v443_v38 = vmul.f32 %v441_v27, %v435_v9  ;;  %v434_v39 = vmax.f32 %v416_v33, 0.0  ;;  %v431_v40 = vadd.f32 %v2390_v37, %v331_v19 }
 0x215   :  { %v425_v42 = vpop.f32.mrf.mxu0 }
 0x216   :  { %v2720_v44 = vadd.f32 %v449_v31, %v443_v38  ;;  %v442_v45 = vmul.f32 %v441_v27, %v434_v39  ;;  %v437_v46 = vmax.f32 %v431_v40, 0.0  ;;  %v426_v47 = vadd.f32 %v425_v42, %v331_v19 }
 0x218   :  { %v2722_v49 = vadd.f32 %v449_v31, %v442_v45  ;;  %v445_v50 = vmul.f32 %v441_v27, %v437_v46  ;;  %v436_v51 = vmax.f32 %v426_v47, 0.0  ;;  %v467_v53 = vadd.f32 %v457_v41, %v2720_v44 }
 0x21a   :  { %v2725_v54 = vadd.f32 %v449_v31, %v445_v50  ;;  %v444_v55 = vmul.f32 %v441_v27, %v436_v51  ;;  %500 = vrot.lane.b32.xlu1 %v467_v53, %s2521_s5  ;;  %v466_v56 = vadd.f32 %v455_v48, %v2722_v49  ;;  %v483_v58 = vrot.slane %v467_v53, 2 }
 0x21b   :  { %v471_v1 = vrot.slane %v467_v53, 6  ;;  %v536_v48 = vsub.s32 1, %v2595_v15  ;;  %v2785_v53 = vld [vmem:[%s3366_s1 + $0x40] sm:$0xff] }
 0x21c   :  { %v2729_v60 = vadd.f32 %v449_v31, %v444_v55  ;;  %498 = vrot.lane.b32.xlu0 %v466_v56, %s2521_s5  ;;  %v469_v61 = vadd.f32 %v461_v57, %v2725_v54  ;;  %v482_v62 = vrot.slane %v466_v56, 2  ;;  %v470_v63 = vrot.slane %v466_v56, 6 }
 0x21d   :  { %v537_v50 = vrot.slane %v2692_v18, %v536_v48  ;;  %v748_v55 = vrot.slane %v2710_v25, 4  ;;  %v649_v57 = vrot.slane %v2699_v20, %v536_v48 }
 0x21e   :  { %v468_v2 = vadd.f32 %v459_v0, %v2729_v60  ;;  %504 = vrot.lane.b32.xlu1 %v469_v61, %s2521_s5  ;;  %v473_v3 = vrot.slane %v469_v61, 6  ;;  %v488_v4 = vsel %vm277_vm2, %v482_v62, %v483_v58  ;;  %v476_v5 = vsel %vm264_vm5, %v470_v63, %v471_v1 }
 0x21f   :  { %v485_v7 = vrot.slane %v469_v61, 2 }
 0x220   :  { %514 = vrot.lane.b32.xlu0 %v488_v4, %s2522_s6  ;;  %v484_v6 = vrot.slane %v468_v2, 2  ;;  %v477_v8 = vsel %vm264_vm5, %v473_v3, %v470_v63  ;;  %v472_v10 = vrot.slane %v468_v2, 6  ;;  %v657_v63 = vrot.slane %v2705_v22, %v536_v48 }
 0x221   :  { %v489_v16 = vsel %vm277_vm2, %v485_v7, %v482_v62  ;;  %v478_v27 = vsel %vm232_vm6, %v477_v8, 0.0 }
 0x222   :  { %v487_v11 = vsel %vm277_vm2, %v483_v58, %v484_v6  ;;  %v474_v12 = vsel %vm264_vm5, %v472_v10, %v473_v3  ;;  %v475_v13 = vsel %vm264_vm5, %v471_v1, %v472_v10  ;;  %v493_v19 = vsel %vm255_vm4, %v489_v16, 0.0 }
 0x223   :  { %v491_v14 = vsel %vm253_vm3, %v487_v11, 0.0  ;;  %v486_v21 = vsel %vm277_vm2, %v484_v6, %v485_v7  ;;  %v480_v39 = vsel %vm234_vm10, %v475_v13, 0.0  ;;  %v749_v58 = vrot.slane %v2785_v53, 4 }
 0x224   :  { %516 = vrot.lane.b32.xlu1 %v491_v14, %s2522_s6  ;;  %502 = vrot.lane.b32.xlu0 %v468_v2, %s2521_s5 }
 0x225   :  { %v750_v1 = vsel %vm747_vm12, %v748_v55, %v749_v58 }
 0x226   :  { %2399 = vmatprep.subr.msk.mxu0 %vm345_vm1, %v750_v1 }
 0x228   :  { %520 = vrot.lane.b32.xlu1 %v493_v19, %s2522_s6  ;;  %518 = vrot.lane.b32.xlu0 %v486_v21, %s2522_s6 }
 0x22c   :  { %664 = vrot.lane.b32.xlu1 %v2601_v23, %s2524_s16  ;;  %662 = vrot.lane.b32.xlu0 %v2604_v28, %s2524_s16 }
 0x230   :  { %668 = vrot.lane.b32.xlu1 %v2608_v32, %s2524_s16  ;;  %666 = vrot.lane.b32.xlu0 %v2611_v35, %s2524_s16  ;;  %s2533_s16 = smov 12  }
 0x28c   :  { %v501_v24 = vpop.permute.xlu1 %500 }
 0x28d   :  { %v527_v33 = vsel %vm318_vm8, %v476_v5, %v501_v24 }
 0x28e   :  { %v499_v26 = vpop.permute.xlu0 %498 }
 0x28f   :  { %v526_v29 = vsel %vm318_vm8, %v478_v27, %v499_v26 }
 0x290   :  { %v505_v30 = vpop.permute.xlu1 %504 }
 0x291   :  { %v529_v40 = vsel %vm318_vm8, %v474_v12, %v505_v30 }
 0x292   :  { %v515_v9 = vpop.permute.xlu0 %514 }
 0x293   :  { %v530_v31 = vsel %vm323_vm7, %v526_v29, %v515_v9 }
 0x294   :  { %2393 = vmatprep.mubr.msk.f32.mxu0 %vm332_vm9, %v530_v31 }
 0x296   :  { %v517_v34 = vpop.permute.xlu1 %516  ;;  %v503_v37 = vpop.permute.xlu0 %502 }
 0x297   :  { %v531_v38 = vsel %vm323_vm7, %v527_v33, %v517_v34  ;;  %v528_v41 = vsel %vm318_vm8, %v480_v39, %v503_v37 }
 0x298   :  { %2394 = vmatmul.mubr.msk.f32.vlgmr.msra.gmra.mxu0 %vm332_vm9, %v531_v38 }
 0x299   :  { %2400 = vmatpush3.msk.msra.mxu0 %vm345_vm1, %v750_v1 }
 0x29a   :  { %v521_v42 = vpop.permute.xlu1 %520  ;;  %v519_v45 = vpop.permute.xlu0 %518 }
 0x29b   :  { %v533_v46 = vsel %vm323_vm7, %v529_v40, %v521_v42  ;;  %v532_v47 = vsel %vm323_vm7, %v528_v41, %v519_v45 }
 0x29c   :  { %2396 = vmatprep.mubr.msk.f32.mxu0 %vm332_vm9, %v532_v47 }
 0x29d   :  { %2397 = vmatmul.mubr.msk.f32.gmra.mxu0 %vm332_vm9, %v533_v46 }
 0x29e   :  { %v665_v5 = vpop.permute.xlu1 %664  ;;  %v663_v12 = vpop.permute.xlu0 %662 }
 0x2a2   :  { %v669_v27 = vpop.permute.xlu1 %668  ;;  %v667_v37 = vpop.permute.xlu0 %666 }
 0x358   :  { %v2395_v51 = vpop.f32.mrf.mxu0 }
 0x359   :  { %v629_v56 = vadd.f32 %v2395_v51, %v537_v50 }
 0x35a   :  { %v623_v61 = vpop.f32.mrf.mxu0 }
 0x35b   :  { %v643_v62 = vmax.f32 %v629_v56, 0.0  ;;  %v624_v0 = vadd.f32 %v623_v61, %v537_v50 }
 0x35d   :  { %v651_v2 = vmul.f32 %v649_v57, %v643_v62  ;;  %v642_v3 = vmax.f32 %v624_v0, 0.0  ;;  %v2398_v4 = vpop.f32.mrf.mxu0 }
 0x35e   :  { %v639_v25 = vadd.f32 %v2398_v4, %v537_v50 }
 0x35f   :  { %v2794_v6 = vadd.f32 %v657_v63, %v651_v2  ;;  %v650_v7 = vmul.f32 %v649_v57, %v642_v3  ;;  %v633_v8 = vpop.f32.mrf.mxu0 }
 0x360   :  { %v645_v10 = vmax.f32 %v639_v25, 0.0  ;;  %v634_v11 = vadd.f32 %v633_v8, %v537_v50 }
 0x361   :  { %v2796_v13 = vadd.f32 %v657_v63, %v650_v7  ;;  %v675_v14 = vadd.f32 %v665_v5, %v2794_v6 }
 0x362   :  { %v653_v16 = vmul.f32 %v649_v57, %v645_v10  ;;  %v644_v19 = vmax.f32 %v634_v11, 0.0 }
 0x363   :  { %708 = vrot.lane.b32.xlu1 %v675_v14, %s2521_s5  ;;  %v674_v21 = vadd.f32 %v663_v12, %v2796_v13  ;;  %v691_v30 = vrot.slane %v675_v14, 2  ;;  %v679_v31 = vrot.slane %v675_v14, 6 }
 0x364   :  { %v2801_v24 = vadd.f32 %v657_v63, %v653_v16  ;;  %v652_v26 = vmul.f32 %v649_v57, %v644_v19 }
 0x365   :  { %706 = vrot.lane.b32.xlu0 %v674_v21, %s2521_s5  ;;  %v690_v29 = vrot.slane %v674_v21, 2  ;;  %v678_v9 = vrot.slane %v674_v21, 6  ;;  %v744_v21 = vsub.s32 2, %v2595_v15 }
 0x366   :  { %v2804_v33 = vadd.f32 %v657_v63, %v652_v26  ;;  %v677_v34 = vadd.f32 %v669_v27, %v2801_v24 }
 0x367   :  { %v696_v38 = vsel %vm277_vm2, %v690_v29, %v691_v30  ;;  %v684_v39 = vsel %vm264_vm5, %v678_v9, %v679_v31  ;;  %v745_v26 = vrot.slane %v2692_v18, %v744_v21 }
 0x368   :  { %712 = vrot.lane.b32.xlu1 %v677_v34, %s2521_s5  ;;  %v681_v40 = vrot.slane %v677_v34, 6  ;;  %v676_v41 = vadd.f32 %v667_v37, %v2804_v33  ;;  %v693_v45 = vrot.slane %v677_v34, 2  ;;  %v865_v34 = vrot.slane %v2705_v22, %v744_v21 }
 0x369   :  { %722 = vrot.lane.b32.xlu0 %v696_v38, %s2522_s6 }
 0x36a   :  { %v692_v42 = vrot.slane %v676_v41, 2  ;;  %v685_v46 = vsel %vm264_vm5, %v681_v40, %v678_v9  ;;  %v680_v47 = vrot.slane %v676_v41, 6  ;;  %v697_v56 = vsel %vm277_vm2, %v693_v45, %v690_v29 }
 0x36b   :  { %v701_v58 = vsel %vm255_vm4, %v697_v56, 0.0  ;;  %v686_v63 = vsel %vm232_vm6, %v685_v46, 0.0 }
 0x36c   :  { %v695_v48 = vsel %vm277_vm2, %v691_v30, %v692_v42  ;;  %v682_v50 = vsel %vm264_vm5, %v680_v47, %v681_v40  ;;  %v683_v51 = vsel %vm264_vm5, %v679_v31, %v680_v47  ;;  %v694_v57 = vsel %vm277_vm2, %v692_v42, %v693_v45 }
 0x36d   :  { %710 = vrot.lane.b32.xlu0 %v676_v41, %s2521_s5  ;;  %v699_v55 = vsel %vm253_vm3, %v695_v48, 0.0  ;;  %v688_v8 = vsel %vm234_vm10, %v683_v51, 0.0  ;;  %v857_v30 = vrot.slane %v2699_v20, %v744_v21  ;;  %v954_v42 = vrot.slane %v2785_v53, 2 }
 0x36e   :  { %724 = vrot.lane.b32.xlu1 %v699_v55, %s2522_s6 }
 0x36f   :  { %2407 = vmatprep.subr.msk.mxu1 %vm345_vm1, %v954_v42 }
 0x370   :  { %2408 = vmatpush3.msk.msra.mxu1 %vm345_vm1, %v954_v42 }
 0x371   :  { %726 = vrot.lane.b32.xlu0 %v694_v57, %s2522_s6 }
 0x372   :  { %728 = vrot.lane.b32.xlu1 %v701_v58, %s2522_s6 }
 0x375   :  { %870 = vrot.lane.b32.xlu0 %v2604_v28, %s2525_s19 }
 0x376   :  { %872 = vrot.lane.b32.xlu1 %v2601_v23, %s2525_s19 }
 0x379   :  { %874 = vrot.lane.b32.xlu0 %v2611_v35, %s2525_s19 }
 0x37a   :  { %876 = vrot.lane.b32.xlu1 %v2608_v32, %s2525_s19  ;;  %s2535_s19 = smov 96  }
 0x3d5   :  { %v709_v61 = vpop.permute.xlu1 %708 }
 0x3d6   :  { %v735_v25 = vsel %vm318_vm8, %v684_v39, %v709_v61 }
 0x3d7   :  { %v707_v62 = vpop.permute.xlu0 %706 }
 0x3d8   :  { %v734_v0 = vsel %vm318_vm8, %v686_v63, %v707_v62 }
 0x3da   :  { %v713_v2 = vpop.permute.xlu1 %712 }
 0x3db   :  { %v723_v1 = vpop.permute.xlu0 %722  ;;  %v737_v12 = vsel %vm318_vm8, %v682_v50, %v713_v2 }
 0x3dc   :  { %v738_v3 = vsel %vm323_vm7, %v734_v0, %v723_v1 }
 0x3dd   :  { %2401 = vmatprep.mubr.msk.f32.mxu0 %vm332_vm9, %v738_v3 }
 0x3df   :  { %v711_v4 = vpop.permute.xlu0 %710 }
 0x3e0   :  { %v725_v5 = vpop.permute.xlu1 %724  ;;  %v736_v10 = vsel %vm318_vm8, %v688_v8, %v711_v4 }
 0x3e1   :  { %v739_v7 = vsel %vm323_vm7, %v735_v25, %v725_v5 }
 0x3e2   :  { %2402 = vmatmul.mubr.msk.f32.vlgmr.msra.gmra.mxu0 %vm332_vm9, %v739_v7 }
 0x3e3   :  { %v727_v11 = vpop.permute.xlu0 %726 }
 0x3e4   :  { %v740_v14 = vsel %vm323_vm7, %v736_v10, %v727_v11  ;;  %v729_v16 = vpop.permute.xlu1 %728 }
 0x3e5   :  { %v741_v19 = vsel %vm323_vm7, %v737_v12, %v729_v16  ;;  %2404 = vmatprep.mubr.msk.f32.mxu0 %vm332_vm9, %v740_v14 }
 0x3e6   :  { %2405 = vmatmul.mubr.msk.f32.gmra.mxu0 %vm332_vm9, %v741_v19 }
 0x3e7   :  { %v871_v55 = vpop.permute.xlu0 %870 }
 0x3e8   :  { %v873_v45 = vpop.permute.xlu1 %872 }
 0x3eb   :  { %v875_v5 = vpop.permute.xlu0 %874 }
 0x3ec   :  { %v877_v0 = vpop.permute.xlu1 %876 }
 0x4a2   :  { %v2403_v27 = vpop.f32.mrf.mxu0 }
 0x4a3   :  { %v837_v29 = vadd.f32 %v2403_v27, %v745_v26 }
 0x4a4   :  { %v831_v9 = vpop.f32.mrf.mxu0 }
 0x4a5   :  { %v851_v31 = vmax.f32 %v837_v29, 0.0  ;;  %v832_v37 = vadd.f32 %v831_v9, %v745_v26 }
 0x4a6   :  { %v2406_v38 = vpop.f32.mrf.mxu0 }
 0x4a7   :  { %v859_v39 = vmul.f32 %v857_v30, %v851_v31  ;;  %v850_v40 = vmax.f32 %v832_v37, 0.0  ;;  %v847_v41 = vadd.f32 %v2406_v38, %v745_v26 }
 0x4a8   :  { %v841_v46 = vpop.f32.mrf.mxu0 }
 0x4a9   :  { %v2859_v47 = vadd.f32 %v865_v34, %v859_v39  ;;  %v858_v48 = vmul.f32 %v857_v30, %v850_v40  ;;  %v853_v50 = vmax.f32 %v847_v41, 0.0  ;;  %v842_v51 = vadd.f32 %v841_v46, %v745_v26 }
 0x4ab   :  { %v2863_v56 = vadd.f32 %v865_v34, %v858_v48  ;;  %v861_v57 = vmul.f32 %v857_v30, %v853_v50  ;;  %v852_v58 = vmax.f32 %v842_v51, 0.0  ;;  %v883_v61 = vadd.f32 %v873_v45, %v2859_v47 }
 0x4ad   :  { %v2866_v62 = vadd.f32 %v865_v34, %v861_v57  ;;  %v860_v53 = vmul.f32 %v857_v30, %v852_v58  ;;  %916 = vrot.lane.b32.xlu1 %v883_v61, %s2521_s5  ;;  %v882_v63 = vadd.f32 %v871_v55, %v2863_v56  ;;  %v899_v1 = vrot.slane %v883_v61, 2 }
 0x4ae   :  { %v887_v7 = vrot.slane %v883_v61, 6 }
 0x4af   :  { %v2870_v2 = vadd.f32 %v865_v34, %v860_v53  ;;  %914 = vrot.lane.b32.xlu0 %v882_v63, %s2521_s5  ;;  %v885_v3 = vadd.f32 %v877_v0, %v2866_v62  ;;  %v898_v4 = vrot.slane %v882_v63, 2  ;;  %v886_v25 = vrot.slane %v882_v63, 6 }
 0x4b1   :  { %v884_v8 = vadd.f32 %v875_v5, %v2870_v2  ;;  %920 = vrot.lane.b32.xlu1 %v885_v3, %s2521_s5  ;;  %v889_v10 = vrot.slane %v885_v3, 6  ;;  %v904_v11 = vsel %vm277_vm2, %v898_v4, %v899_v1  ;;  %v892_v12 = vsel %vm264_vm5, %v886_v25, %v887_v7 }
 0x4b2   :  { %v901_v16 = vrot.slane %v885_v3, 2 }
 0x4b3   :  { %930 = vrot.lane.b32.xlu0 %v904_v11, %s2522_s6  ;;  %v900_v14 = vrot.slane %v884_v8, 2  ;;  %v893_v19 = vsel %vm264_vm5, %v889_v10, %v886_v25  ;;  %v888_v21 = vrot.slane %v884_v8, 6  ;;  %v2926_v25 = vld [vmem:[%s3366_s1 + $0x50] sm:$0xff] }
 0x4b4   :  { %v905_v9 = vsel %vm277_vm2, %v901_v16, %v898_v4  ;;  %v894_v39 = vsel %vm232_vm6, %v893_v19, 0.0  ;;  %2415 = vmatprep.subr.msk.mxu0 %vm345_vm1, %v2926_v25 }
 0x4b5   :  { %v903_v26 = vsel %vm277_vm2, %v899_v1, %v900_v14  ;;  %v890_v27 = vsel %vm264_vm5, %v888_v21, %v889_v10  ;;  %v891_v29 = vsel %vm264_vm5, %v887_v7, %v888_v21  ;;  %v909_v31 = vsel %vm255_vm4, %v905_v9, 0.0  ;;  %2416 = vmatpush3.msk.msra.mxu0 %vm345_vm1, %v2926_v25 }
 0x4b6   :  { %v907_v30 = vsel %vm253_vm3, %v903_v26, 0.0  ;;  %v902_v34 = vsel %vm277_vm2, %v900_v14, %v901_v16  ;;  %v896_v55 = vsel %vm234_vm10, %v891_v29, 0.0  ;;  %v952_v1 = vsub.s32 3, %v2595_v15 }
 0x4b7   :  { %932 = vrot.lane.b32.xlu1 %v907_v30, %s2522_s6  ;;  %918 = vrot.lane.b32.xlu0 %v884_v8, %s2521_s5 }
 0x4b8   :  { %v953_v3 = vrot.slane %v2692_v18, %v952_v1  ;;  %v1061_v7 = vrot.slane %v2699_v20, %v952_v1  ;;  %v1069_v11 = vrot.slane %v2705_v22, %v952_v1 }
 0x4bb   :  { %936 = vrot.lane.b32.xlu1 %v909_v31, %s2522_s6  ;;  %934 = vrot.lane.b32.xlu0 %v902_v34, %s2522_s6 }
 0x4bf   :  { %1076 = vrot.lane.b32.xlu1 %v2601_v23, %s2526_s20  ;;  %1074 = vrot.lane.b32.xlu0 %v2604_v28, %s2526_s20 }
 0x4c3   :  { %1080 = vrot.lane.b32.xlu1 %v2608_v32, %s2526_s20  ;;  %1078 = vrot.lane.b32.xlu0 %v2611_v35, %s2526_s20 }
 0x51f   :  { %v917_v37 = vpop.permute.xlu1 %916 }
 0x520   :  { %v943_v46 = vsel %vm318_vm8, %v892_v12, %v917_v37 }
 0x521   :  { %v915_v38 = vpop.permute.xlu0 %914 }
 0x522   :  { %v942_v40 = vsel %vm318_vm8, %v894_v39, %v915_v38 }
 0x523   :  { %v921_v41 = vpop.permute.xlu1 %920 }
 0x524   :  { %v945_v57 = vsel %vm318_vm8, %v890_v27, %v921_v41 }
 0x525   :  { %v931_v42 = vpop.permute.xlu0 %930 }
 0x526   :  { %v946_v45 = vsel %vm323_vm7, %v942_v40, %v931_v42 }
 0x527   :  { %2409 = vmatprep.mubr.msk.f32.mxu1 %vm332_vm9, %v946_v45 }
 0x529   :  { %v933_v48 = vpop.permute.xlu1 %932  ;;  %v919_v50 = vpop.permute.xlu0 %918 }
 0x52a   :  { %v947_v51 = vsel %vm323_vm7, %v943_v46, %v933_v48  ;;  %v944_v58 = vsel %vm318_vm8, %v896_v55, %v919_v50 }
 0x52b   :  { %2410 = vmatmul.mubr.msk.f32.vlgmr.msra.gmra.mxu1 %vm332_vm9, %v947_v51 }
 0x52d   :  { %v937_v61 = vpop.permute.xlu1 %936  ;;  %v935_v53 = vpop.permute.xlu0 %934 }
 0x52e   :  { %v949_v63 = vsel %vm323_vm7, %v945_v57, %v937_v61  ;;  %v948_v0 = vsel %vm323_vm7, %v944_v58, %v935_v53 }
 0x52f   :  { %2412 = vmatprep.mubr.msk.f32.mxu1 %vm332_vm9, %v948_v0 }
 0x530   :  { %2413 = vmatmul.mubr.msk.f32.gmra.mxu1 %vm332_vm9, %v949_v63 }
 0x531   :  { %v1077_v26 = vpop.permute.xlu1 %1076  ;;  %v1075_v34 = vpop.permute.xlu0 %1074 }
 0x535   :  { %v1081_v46 = vpop.permute.xlu1 %1080  ;;  %v1079_v61 = vpop.permute.xlu0 %1078 }
 0x5eb   :  { %v2411_v4 = vpop.f32.mrf.mxu1 }
 0x5ec   :  { %v1041_v5 = vadd.f32 %v2411_v4, %v953_v3 }
 0x5ed   :  { %v1035_v8 = vpop.f32.mrf.mxu1 }
 0x5ee   :  { %v1055_v10 = vmax.f32 %v1041_v5, 0.0  ;;  %v1036_v12 = vadd.f32 %v1035_v8, %v953_v3 }
 0x5f0   :  { %v1063_v14 = vmul.f32 %v1061_v7, %v1055_v10  ;;  %v1054_v16 = vmax.f32 %v1036_v12, 0.0  ;;  %v2414_v19 = vpop.f32.mrf.mxu1 }
 0x5f1   :  { %v1051_v21 = vadd.f32 %v2414_v19, %v953_v3 }
 0x5f2   :  { %v2934_v27 = vadd.f32 %v1069_v11, %v1063_v14  ;;  %v1062_v29 = vmul.f32 %v1061_v7, %v1054_v16  ;;  %v1045_v30 = vpop.f32.mrf.mxu1 }
 0x5f3   :  { %v1057_v9 = vmax.f32 %v1051_v21, 0.0  ;;  %v1046_v31 = vadd.f32 %v1045_v30, %v953_v3 }
 0x5f4   :  { %v2936_v37 = vadd.f32 %v1069_v11, %v1062_v29  ;;  %v1087_v38 = vadd.f32 %v1077_v26, %v2934_v27 }
 0x5f5   :  { %v1065_v39 = vmul.f32 %v1061_v7, %v1057_v9  ;;  %v1056_v40 = vmax.f32 %v1046_v31, 0.0 }
 0x5f6   :  { %1120 = vrot.lane.b32.xlu1 %v1087_v38, %s2521_s5  ;;  %v1086_v41 = vadd.f32 %v1075_v34, %v2936_v37  ;;  %v1103_v50 = vrot.slane %v1087_v38, 2  ;;  %v1091_v55 = vrot.slane %v1087_v38, 6 }
 0x5f7   :  { %v2941_v42 = vadd.f32 %v1069_v11, %v1065_v39  ;;  %v1064_v45 = vmul.f32 %v1061_v7, %v1056_v40 }
 0x5f8   :  { %1118 = vrot.lane.b32.xlu0 %v1086_v41, %s2521_s5  ;;  %v1102_v48 = vrot.slane %v1086_v41, 2  ;;  %v1090_v51 = vrot.slane %v1086_v41, 6 }
 0x5f9   :  { %v2944_v57 = vadd.f32 %v1069_v11, %v1064_v45  ;;  %v1089_v58 = vadd.f32 %v1081_v46, %v2941_v42 }
 0x5fa   :  { %v1108_v53 = vsel %vm277_vm2, %v1102_v48, %v1103_v50  ;;  %v1096_v63 = vsel %vm264_vm5, %v1090_v51, %v1091_v55 }
 0x5fb   :  { %1124 = vrot.lane.b32.xlu1 %v1089_v58, %s2521_s5  ;;  %v1093_v0 = vrot.slane %v1089_v58, 6  ;;  %v1088_v1 = vadd.f32 %v1079_v61, %v2944_v57  ;;  %v1105_v4 = vrot.slane %v1089_v58, 2  ;;  %v1156_v61 = vsub.s32 4, %v2595_v15 }
 0x5fc   :  { %1134 = vrot.lane.b32.xlu0 %v1108_v53, %s2522_s6 }
 0x5fd   :  { %v1104_v3 = vrot.slane %v1088_v1, 2  ;;  %v1097_v5 = vsel %vm264_vm5, %v1093_v0, %v1090_v51  ;;  %v1092_v7 = vrot.slane %v1088_v1, 6  ;;  %v1109_v14 = vsel %vm277_vm2, %v1105_v4, %v1102_v48 }
 0x5fe   :  { %v1113_v19 = vsel %vm255_vm4, %v1109_v14, 0.0  ;;  %v1098_v29 = vsel %vm232_vm6, %v1097_v5, 0.0  ;;  %v1157_v53 = vrot.slane %v2692_v18, %v1156_v61 }
 0x5ff   :  { %v1107_v8 = vsel %vm277_vm2, %v1103_v50, %v1104_v3  ;;  %v1094_v10 = vsel %vm264_vm5, %v1092_v7, %v1093_v0  ;;  %v1095_v11 = vsel %vm264_vm5, %v1091_v55, %v1092_v7  ;;  %v1106_v16 = vsel %vm277_vm2, %v1104_v3, %v1105_v4 }
 0x600   :  { %1122 = vrot.lane.b32.xlu0 %v1088_v1, %s2521_s5  ;;  %v1111_v12 = vsel %vm253_vm3, %v1107_v8, 0.0  ;;  %v1100_v45 = vsel %vm234_vm10, %v1095_v11, 0.0  ;;  %v3000_v1 = vld [vmem:[%s3366_s1 + $0x60] sm:$0xff]  ;;  %v1265_v4 = vrot.slane %v2699_v20, %v1156_v61 }
 0x601   :  { %1136 = vrot.lane.b32.xlu1 %v1111_v12, %s2522_s6  ;;  %v1364_v5 = vrot.slane %v3000_v1, 6 }
 0x604   :  { %1138 = vrot.lane.b32.xlu0 %v1106_v16, %s2522_s6 }
 0x605   :  { %1140 = vrot.lane.b32.xlu1 %v1113_v19, %s2522_s6 }
 0x608   :  { %1278 = vrot.lane.b32.xlu0 %v2604_v28, %s2527_s23 }
 0x609   :  { %1280 = vrot.lane.b32.xlu1 %v2601_v23, %s2527_s23 }
 0x60c   :  { %1282 = vrot.lane.b32.xlu0 %v2611_v35, %s2527_s23 }
 0x60d   :  { %1284 = vrot.lane.b32.xlu1 %v2608_v32, %s2527_s23 }
 0x668   :  { %v1121_v21 = vpop.permute.xlu1 %1120 }
 0x669   :  { %v1147_v39 = vsel %vm318_vm8, %v1096_v63, %v1121_v21  ;;  %v1363_v63 = vrot.slane %v2926_v25, 6 }
 0x66a   :  { %v1119_v26 = vpop.permute.xlu0 %1118 }
 0x66b   :  { %v1146_v30 = vsel %vm318_vm8, %v1098_v29, %v1119_v26  ;;  %v1365_v12 = vsel %vm539_vm11, %v1363_v63, %v1364_v5 }
 0x66c   :  { %2423 = vmatprep.subr.msk.mxu1 %vm345_vm1, %v1365_v12 }
 0x66d   :  { %v1125_v31 = vpop.permute.xlu1 %1124  ;;  %2424 = vmatpush3.msk.msra.mxu1 %vm345_vm1, %v1365_v12 }
 0x66e   :  { %v1135_v9 = vpop.permute.xlu0 %1134  ;;  %v1149_v50 = vsel %vm318_vm8, %v1094_v10, %v1125_v31  ;;  %v1273_v10 = vrot.slane %v2705_v22, %v1156_v61 }
 0x66f   :  { %v1150_v34 = vsel %vm323_vm7, %v1146_v30, %v1135_v9 }
 0x670   :  { %2417 = vmatprep.mubr.msk.f32.mxu0 %vm332_vm9, %v1150_v34 }
 0x672   :  { %v1123_v38 = vpop.permute.xlu0 %1122 }
 0x673   :  { %v1137_v40 = vpop.permute.xlu1 %1136  ;;  %v1148_v46 = vsel %vm318_vm8, %v1100_v45, %v1123_v38 }
 0x674   :  { %v1151_v41 = vsel %vm323_vm7, %v1147_v39, %v1137_v40 }
 0x675   :  { %2418 = vmatmul.mubr.msk.f32.vlgmr.msra.gmra.mxu0 %vm332_vm9, %v1151_v41 }
 0x676   :  { %v1139_v48 = vpop.permute.xlu0 %1138 }
 0x677   :  { %v1152_v51 = vsel %vm323_vm7, %v1148_v46, %v1139_v48  ;;  %v1141_v55 = vpop.permute.xlu1 %1140 }
 0x678   :  { %v1153_v58 = vsel %vm323_vm7, %v1149_v50, %v1141_v55  ;;  %2420 = vmatprep.mubr.msk.f32.mxu0 %vm332_vm9, %v1152_v51 }
 0x679   :  { %2421 = vmatmul.mubr.msk.f32.gmra.mxu0 %vm332_vm9, %v1153_v58 }
 0x67a   :  { %v1279_v34 = vpop.permute.xlu0 %1278 }
 0x67b   :  { %v1281_v21 = vpop.permute.xlu1 %1280 }
 0x67e   :  { %v1283_v63 = vpop.permute.xlu0 %1282 }
 0x67f   :  { %v1285_v50 = vpop.permute.xlu1 %1284 }
 0x735   :  { %v2419_v0 = vpop.f32.mrf.mxu0 }
 0x736   :  { %v1245_v3 = vadd.f32 %v2419_v0, %v1157_v53 }
 0x737   :  { %v1239_v7 = vpop.f32.mrf.mxu0 }
 0x738   :  { %v1259_v8 = vmax.f32 %v1245_v3, 0.0  ;;  %v1240_v11 = vadd.f32 %v1239_v7, %v1157_v53 }
 0x739   :  { %v2422_v14 = vpop.f32.mrf.mxu0 }
 0x73a   :  { %v1267_v25 = vmul.f32 %v1265_v4, %v1259_v8  ;;  %v1258_v16 = vmax.f32 %v1240_v11, 0.0  ;;  %v1255_v19 = vadd.f32 %v2422_v14, %v1157_v53 }
 0x73b   :  { %v1249_v26 = vpop.f32.mrf.mxu0 }
 0x73c   :  { %v3008_v29 = vadd.f32 %v1273_v10, %v1267_v25  ;;  %v1266_v30 = vmul.f32 %v1265_v4, %v1258_v16  ;;  %v1261_v9 = vmax.f32 %v1255_v19, 0.0  ;;  %v1250_v31 = vadd.f32 %v1249_v26, %v1157_v53 }
 0x73e   :  { %v3010_v38 = vadd.f32 %v1273_v10, %v1266_v30  ;;  %v1269_v39 = vmul.f32 %v1265_v4, %v1261_v9  ;;  %v1260_v40 = vmax.f32 %v1250_v31, 0.0  ;;  %v1291_v41 = vadd.f32 %v1281_v21, %v3008_v29 }
 0x740   :  { %v3013_v45 = vadd.f32 %v1273_v10, %v1269_v39  ;;  %v1268_v46 = vmul.f32 %v1265_v4, %v1260_v40  ;;  %1324 = vrot.lane.b32.xlu1 %v1291_v41, %s2521_s5  ;;  %v1290_v48 = vadd.f32 %v1279_v34, %v3010_v38  ;;  %v1307_v51 = vrot.slane %v1291_v41, 2 }
 0x741   :  { %v1295_v0 = vrot.slane %v1291_v41, 6 }
 0x742   :  { %v3017_v55 = vadd.f32 %v1273_v10, %v1268_v46  ;;  %1322 = vrot.lane.b32.xlu0 %v1290_v48, %s2521_s5  ;;  %v1293_v58 = vadd.f32 %v1285_v50, %v3013_v45  ;;  %v1306_v61 = vrot.slane %v1290_v48, 2  ;;  %v1294_v53 = vrot.slane %v1290_v48, 6 }
 0x744   :  { %v1292_v3 = vadd.f32 %v1283_v63, %v3017_v55  ;;  %1328 = vrot.lane.b32.xlu1 %v1293_v58, %s2521_s5  ;;  %v1297_v4 = vrot.slane %v1293_v58, 6  ;;  %v1312_v5 = vsel %vm277_vm2, %v1306_v61, %v1307_v51  ;;  %v1300_v7 = vsel %vm264_vm5, %v1294_v53, %v1295_v0 }
 0x745   :  { %v1309_v10 = vrot.slane %v1293_v58, 2 }
 0x746   :  { %1338 = vrot.lane.b32.xlu0 %v1312_v5, %s2522_s6  ;;  %v1308_v8 = vrot.slane %v1292_v3, 2  ;;  %v1301_v11 = vsel %vm264_vm5, %v1297_v4, %v1294_v53  ;;  %v1296_v12 = vrot.slane %v1292_v3, 6 }
 0x747   :  { %v1313_v21 = vsel %vm277_vm2, %v1309_v10, %v1306_v61  ;;  %v1302_v34 = vsel %vm232_vm6, %v1301_v11, 0.0  ;;  %v37_v11 = vld [vmem:[%s3366_s1 + $0x70] sm:$0x3] }
 0x748   :  { %v1311_v14 = vsel %vm277_vm2, %v1307_v51, %v1308_v8  ;;  %v1298_v25 = vsel %vm264_vm5, %v1296_v12, %v1297_v4  ;;  %v1299_v16 = vsel %vm264_vm5, %v1295_v0, %v1296_v12  ;;  %v1317_v26 = vsel %vm255_vm4, %v1313_v21, 0.0 }
 0x749   :  { %v1315_v19 = vsel %vm253_vm3, %v1311_v14, 0.0  ;;  %v1310_v30 = vsel %vm277_vm2, %v1308_v8, %v1309_v10  ;;  %v1304_v61 = vsel %vm234_vm10, %v1299_v16, 0.0  ;;  %v1570_v12 = vrot.slane %v3000_v1, 4 }
 0x74a   :  { %1340 = vrot.lane.b32.xlu1 %v1315_v19, %s2522_s6  ;;  %1326 = vrot.lane.b32.xlu0 %v1292_v3, %s2521_s5  ;;  %v1571_v16 = vrot.slane %v37_v11, 4 }
 0x74e   :  { %1344 = vrot.lane.b32.xlu1 %v1317_v26, %s2522_s6  ;;  %1342 = vrot.lane.b32.xlu0 %v1310_v30, %s2522_s6 }
 0x752   :  { %1487 = vrot.lane.b32.xlu1 %v2601_v23, %s2528_s26  ;;  %1485 = vrot.lane.b32.xlu0 %v2604_v28, %s2528_s26 }
 0x756   :  { %1491 = vrot.lane.b32.xlu1 %v2608_v32, %s2528_s26  ;;  %1489 = vrot.lane.b32.xlu0 %v2611_v35, %s2528_s26 }
 0x7b2   :  { %v1325_v9 = vpop.permute.xlu1 %1324 }
 0x7b3   :  { %v1351_v48 = vsel %vm318_vm8, %v1300_v7, %v1325_v9  ;;  %v1360_v7 = vsub.s32 5, %v2595_v15  ;;  %v1572_v9 = vsel %vm747_vm12, %v1570_v12, %v1571_v16 }
 0x7b4   :  { %v1323_v31 = vpop.permute.xlu0 %1322  ;;  %2431 = vmatprep.subr.msk.mxu0 %vm345_vm1, %v1572_v9 }
 0x7b5   :  { %v1350_v39 = vsel %vm318_vm8, %v1302_v34, %v1323_v31  ;;  %v1361_v8 = vrot.slane %v2692_v18, %v1360_v7  ;;  %v1480_v26 = vrot.slane %v2705_v22, %v1360_v7  ;;  %2432 = vmatpush3.msk.msra.mxu0 %vm345_vm1, %v1572_v9  ;;  %vm1815_vm1 = vcmask 113664  }
 0x7b6   :  { %v1329_v40 = vpop.permute.xlu1 %1328 }
 0x7b7   :  { %v1353_v53 = vsel %vm318_vm8, %v1298_v25, %v1329_v40  ;;  %v1472_v25 = vrot.slane %v2699_v20, %v1360_v7 }
 0x7b8   :  { %v1339_v41 = vpop.permute.xlu0 %1338 }
 0x7b9   :  { %v1354_v46 = vsel %vm323_vm7, %v1350_v39, %v1339_v41 }
 0x7ba   :  { %2425 = vmatprep.mubr.msk.f32.mxu1 %vm332_vm9, %v1354_v46 }
 0x7bc   :  { %v1341_v50 = vpop.permute.xlu1 %1340  ;;  %v1327_v51 = vpop.permute.xlu0 %1326 }
 0x7bd   :  { %v1355_v58 = vsel %vm323_vm7, %v1351_v48, %v1341_v50  ;;  %v1352_v63 = vsel %vm318_vm8, %v1304_v61, %v1327_v51 }
 0x7be   :  { %2426 = vmatmul.mubr.msk.f32.vlgmr.msra.gmra.mxu1 %vm332_vm9, %v1355_v58 }
 0x7c0   :  { %v1345_v0 = vpop.permute.xlu1 %1344  ;;  %v1343_v3 = vpop.permute.xlu0 %1342 }
 0x7c1   :  { %v1357_v4 = vsel %vm323_vm7, %v1353_v53, %v1345_v0  ;;  %v1356_v5 = vsel %vm323_vm7, %v1352_v63, %v1343_v3 }
 0x7c2   :  { %2428 = vmatprep.mubr.msk.f32.mxu1 %vm332_vm9, %v1356_v5 }
 0x7c3   :  { %2429 = vmatmul.mubr.msk.f32.gmra.mxu1 %vm332_vm9, %v1357_v4 }
 0x7c4   :  { %v1488_v1 = vpop.permute.xlu1 %1487  ;;  %v1486_v50 = vpop.permute.xlu0 %1485 }
 0x7c8   :  { %v1492_v3 = vpop.permute.xlu1 %1491 }
 0x87e   :  { %v2427_v10 = vpop.f32.mrf.mxu1 }
 0x87f   :  { %v1452_v14 = vadd.f32 %v2427_v10, %v1361_v8 }
 0x880   :  { %v1446_v19 = vpop.f32.mrf.mxu1 }
 0x881   :  { %v1466_v21 = vmax.f32 %v1452_v14, 0.0  ;;  %v1447_v30 = vadd.f32 %v1446_v19, %v1361_v8 }
 0x883   :  { %v1474_v18 = vmul.f32 %v1472_v25, %v1466_v21  ;;  %v1465_v31 = vmax.f32 %v1447_v30, 0.0  ;;  %v2430_v34 = vpop.f32.mrf.mxu1 }
 0x884   :  { %v1462_v39 = vadd.f32 %v2430_v34, %v1361_v8 }
 0x885   :  { %v1482_v40 = vadd.f32 %v1480_v26, %v1474_v18  ;;  %v1473_v41 = vmul.f32 %v1472_v25, %v1465_v31  ;;  %v1456_v20 = vpop.f32.mrf.mxu1 }
 0x886   :  { %v1468_v46 = vmax.f32 %v1462_v39, 0.0  ;;  %v1457_v48 = vadd.f32 %v1456_v20, %v1361_v8  ;;  %v1490_v8 = vpop.permute.xlu0 %1489 }
 0x887   :  { %v1481_v51 = vadd.f32 %v1480_v26, %v1473_v41  ;;  %v1498_v22 = vadd.f32 %v1488_v1, %v1482_v40 }
 0x888   :  { %v1476_v58 = vmul.f32 %v1472_v25, %v1468_v46  ;;  %v1467_v61 = vmax.f32 %v1457_v48, 0.0 }
 0x889   :  { %1531 = vrot.lane.b32.xlu1 %v1498_v22, %s2521_s5  ;;  %v1497_v53 = vadd.f32 %v1486_v50, %v1481_v51  ;;  %v1514_v5 = vrot.slane %v1498_v22, 2  ;;  %v1502_v10 = vrot.slane %v1498_v22, 6 }
 0x88a   :  { %v1484_v63 = vadd.f32 %v1480_v26, %v1476_v58  ;;  %v1475_v0 = vmul.f32 %v1472_v25, %v1467_v61 }
 0x88b   :  { %1529 = vrot.lane.b32.xlu0 %v1497_v53, %s2521_s5  ;;  %v1513_v4 = vrot.slane %v1497_v53, 2  ;;  %v1501_v7 = vrot.slane %v1497_v53, 6 }
 0x88c   :  { %v1483_v11 = vadd.f32 %v1480_v26, %v1475_v0  ;;  %v1500_v12 = vadd.f32 %v1492_v3, %v1484_v63 }
 0x88d   :  { %v1519_v14 = vsel %vm277_vm2, %v1513_v4, %v1514_v5  ;;  %v1507_v16 = vsel %vm264_vm5, %v1501_v7, %v1502_v10 }
 0x88e   :  { %1535 = vrot.lane.b32.xlu1 %v1500_v12, %s2521_s5  ;;  %v1504_v19 = vrot.slane %v1500_v12, 6  ;;  %v1499_v25 = vadd.f32 %v1490_v8, %v1483_v11  ;;  %v1516_v30 = vrot.slane %v1500_v12, 2 }
 0x88f   :  { %1545 = vrot.lane.b32.xlu0 %v1519_v14, %s2522_s6  ;;  %v1567_v14 = vsub.s32 6, %v2595_v15 }
 0x890   :  { %v1515_v21 = vrot.slane %v1499_v25, 2  ;;  %v1508_v9 = vsel %vm264_vm5, %v1504_v19, %v1501_v7  ;;  %v1503_v26 = vrot.slane %v1499_v25, 6  ;;  %v1520_v1 = vsel %vm277_vm2, %v1516_v30, %v1513_v4 }
 0x891   :  { %v1524_v20 = vsel %vm255_vm4, %v1520_v1, 0.0  ;;  %vm1976_vm4 = vcmask 1041409  }
 0x892   :  { %v1518_v18 = vsel %vm277_vm2, %v1514_v5, %v1515_v21  ;;  %v1505_v31 = vsel %vm264_vm5, %v1503_v26, %v1504_v19  ;;  %v1506_v34 = vsel %vm264_vm5, %v1502_v10, %v1503_v26  ;;  %v1517_v41 = vsel %vm277_vm2, %v1515_v21, %v1516_v30 }
 0x893   :  { %1533 = vrot.lane.b32.xlu0 %v1499_v25, %s2521_s5  ;;  %v1522_v39 = vsel %vm253_vm3, %v1518_v18, 0.0  ;;  %v2516_v18 = vld [vmem:[%s3368_s2 + $0x16] sm:$0x7f]  ;;  %vm1988_vm2 = vcmask 785408   ;;  %vm2536_vm3 = vmmov 0  }
 0x894   :  { %1547 = vrot.lane.b32.xlu1 %v1522_v39, %s2522_s6 }
 0x897   :  { %1549 = vrot.lane.b32.xlu0 %v1517_v41, %s2522_s6 }
 0x898   :  { %1551 = vrot.lane.b32.xlu1 %v1524_v20, %s2522_s6 }
 0x89b   :  { %1696 = vrot.lane.b32.xlu0 %v2796_v13, %s2521_s5 }
 0x89c   :  { %1698 = vrot.lane.b32.xlu1 %v2794_v6, %s2521_s5 }
 0x89f   :  { %1712 = vrot.lane.b32.xlu0 %v2863_v56, %s2522_s6 }
 0x8a0   :  { %1714 = vrot.lane.b32.xlu1 %v2859_v47, %s2522_s6 }
 0x8a3   :  { %1728 = vrot.lane.b32.xlu0 %v2936_v37, %s2529_s29 }
 0x8a4   :  { %1730 = vrot.lane.b32.xlu1 %v2934_v27, %s2529_s29 }
 0x8a7   :  { %1744 = vrot.lane.b32.xlu0 %v3010_v38, %s2530_s30 }
 0x8a8   :  { %1700 = vrot.lane.b32.xlu1 %v2804_v33, %s2521_s5 }
 0x8ab   :  { %1746 = vrot.lane.b32.xlu0 %v3008_v29, %s2530_s30 }
 0x8ac   :  { %1760 = vrot.lane.b32.xlu1 %v1481_v51, %s2531_s4 }
 0x8af   :  { %1828 = vrot.lane.b32.xlu0 %v3124_v36, %s2532_s9 }
 0x8b0   :  { %1702 = vrot.lane.b32.xlu1 %v2801_v24, %s2521_s5  ;;  %v1509_v24 = vsel %vm232_vm6, %v1508_v9, 0.0 }
 0x8b3   :  { %1716 = vrot.lane.b32.xlu0 %v2870_v2, %s2522_s6 }
 0x8b4   :  { %1762 = vrot.lane.b32.xlu1 %v1482_v40, %s2531_s4 }
 0x8b7   :  { %1732 = vrot.lane.b32.xlu0 %v2944_v57, %s2529_s29  ;;  %v1511_v57 = vsel %vm234_vm10, %v1506_v34, 0.0 }
 0x8b8   :  { %1718 = vrot.lane.b32.xlu1 %v2866_v62, %s2522_s6 }
 0x8bb   :  { %1826 = vrot.lane.b32.xlu0 %v3137_v43, %s2532_s9 }
 0x8bc   :  { %1734 = vrot.lane.b32.xlu1 %v2941_v42, %s2529_s29 }
 0x8bf   :  { %1748 = vrot.lane.b32.xlu0 %v3017_v55, %s2530_s30 }
 0x8c0   :  { %1750 = vrot.lane.b32.xlu1 %v3013_v45, %s2530_s30 }
 0x8c3   :  { %1764 = vrot.lane.b32.xlu0 %v1483_v11, %s2531_s4 }
 0x8c4   :  { %1766 = vrot.lane.b32.xlu1 %v1484_v63, %s2531_s4 }
 0x8fb   :  { %v1532_v6 = vpop.permute.xlu1 %1531 }
 0x8fc   :  { %v1558_v27 = vsel %vm318_vm8, %v1507_v16, %v1532_v6  ;;  %v2514_v16 = vld [vmem:[%s3368_s2 + $0x8] sm:$0x7f] }
 0x8fd   :  { %v1530_v13 = vpop.permute.xlu0 %1529  ;;  %v1568_v19 = vrot.slane %v2514_v16, %v1567_v14 }
 0x8fe   :  { %v1557_v33 = vsel %vm318_vm8, %v1509_v24, %v1530_v13 }
 0x900   :  { %v1536_v56 = vpop.permute.xlu1 %1535 }
 0x901   :  { %v1546_v47 = vpop.permute.xlu0 %1545  ;;  %v1560_v38 = vsel %vm318_vm8, %v1505_v31, %v1536_v56  ;;  %v1687_v31 = vrot.slane %v2516_v18, %v1567_v14 }
 0x902   :  { %v1561_v62 = vsel %vm323_vm7, %v1557_v33, %v1546_v47 }
 0x903   :  { %2433 = vmatprep.mubr.msk.f32.mxu0 %vm332_vm9, %v1561_v62 }
 0x905   :  { %v1534_v2 = vpop.permute.xlu0 %1533 }
 0x906   :  { %v1548_v37 = vpop.permute.xlu1 %1547  ;;  %v1559_v52 = vsel %vm318_vm8, %v1511_v57, %v1534_v2 }
 0x907   :  { %v1562_v42 = vsel %vm323_vm7, %v1558_v27, %v1548_v37 }
 0x908   :  { %2434 = vmatmul.mubr.msk.f32.vlgmr.msra.gmra.mxu0 %vm332_vm9, %v1562_v42  ;;  %v2534_v42 = vmov 0.0  }
 0x909   :  { %v1550_v29 = vpop.permute.xlu0 %1549  ;;  %2449 = vmatprep.subr.mxu0 %v2534_v42 }
 0x90a   :  { %v1563_v45 = vsel %vm323_vm7, %v1559_v52, %v1550_v29  ;;  %v1552_v55 = vpop.permute.xlu1 %1551  ;;  %v17_v52 = vld [vmem:[%s3366_s1 + $0x18] sm:$0xff]  ;;  %v16_v29 = vld [vmem:[%s3366_s1 + $0x8] sm:$0xff] }
 0x90b   :  { %v1564_v40 = vsel %vm323_vm7, %v1560_v38, %v1552_v55  ;;  %2436 = vmatprep.mubr.msk.f32.mxu0 %vm332_vm9, %v1563_v45  ;;  %v30_v38 = vld [vmem:[%s3366_s1 + $0xe8] sm:$0xff]  ;;  %v31_v45 = vld [vmem:[%s3366_s1 + $0xf8] sm:$0xff] }
 0x90c   :  { %2437 = vmatmul.mubr.msk.f32.gmra.mxu0 %vm332_vm9, %v1564_v40  ;;  %v28_v55 = vld [vmem:[%s3366_s1 + $0xc8] sm:$0xff]  ;;  %v27_v40 = vld [vmem:[%s3366_s1 + $0xb8] sm:$0xff] }
 0x90d   :  { %v1697_v46 = vpop.permute.xlu0 %1696  ;;  %2453 = vmatprep.mubr.msk.f32.mxu0 %vm2536_vm3, %v2534_v42 }
 0x90e   :  { %v1788_v59 = vsel %vm318_vm8, %v2722_v49, %v1697_v46  ;;  %v3162_v51 = vpop.permute.xlu1 %1698  ;;  %v24_v46 = vld [vmem:[%s3366_s1 + $0x88] sm:$0xff] }
 0x911   :  { %v1713_v48 = vpop.permute.xlu0 %1712 }
 0x912   :  { %v1792_v50 = vsel %vm323_vm7, %v1788_v59, %v1713_v48  ;;  %v3165_v61 = vpop.permute.xlu1 %1714  ;;  %v25_v59 = vld [vmem:[%s3366_s1 + $0x98] sm:$0xff]  ;;  %v22_v48 = vld [vmem:[%s3366_s1 + $0x68] sm:$0xff] }
 0x915   :  { %v1729_v22 = vpop.permute.xlu0 %1728 }
 0x916   :  { %v1796_v58 = vsel %vm332_vm9, %v1792_v50, %v1729_v22  ;;  %v3172_v3 = vpop.permute.xlu1 %1730  ;;  %v23_v50 = vld [vmem:[%s3366_s1 + $0x78] sm:$0xff]  ;;  %v20_v22 = vld [vmem:[%s3366_s1 + $0x48] sm:$0xff] }
 0x919   :  { %v1745_v53 = vpop.permute.xlu0 %1744 }
 0x91a   :  { %v3168_v63 = vsel %vm1800_vm13, %v1796_v58, %v1745_v53  ;;  %v1701_v4 = vpop.permute.xlu1 %1700  ;;  %v21_v58 = vld [vmem:[%s3366_s1 + $0x58] sm:$0xff]  ;;  %v18_v53 = vld [vmem:[%s3366_s1 + $0x28] sm:$0xff] }
 0x91b   :  { %v1790_v7 = vsel %vm318_vm8, %v2729_v60, %v1701_v4  ;;  %v2515_v60 = vld [vmem:[%s3368_s2 + $0xf] sm:$0x7f] }
 0x91c   :  { %v1679_v30 = vrot.slane %v2515_v60, %v1567_v14 }
 0x91d   :  { %v3170_v0 = vpop.permute.xlu0 %1746 }
 0x91e   :  { %v1761_v4 = vpop.permute.xlu1 %1760 }
 0x921   :  { %v1829_v49 = vpop.permute.xlu0 %1828 }
 0x922   :  { %2439 = vmatprep.subr.mxu1 %v1829_v49 }
 0x923   :  { %2440 = vmatpush3.msra.mxu1 %v1829_v49  ;;  %v19_v49 = vld [vmem:[%s3366_s1 + $0x38] sm:$0xff] }
 0x925   :  { %v1717_v5 = vpop.permute.xlu0 %1716 }
 0x926   :  { %v1794_v10 = vsel %vm323_vm7, %v1790_v7, %v1717_v5  ;;  %v1703_v5 = vpop.permute.xlu1 %1702 }
 0x929   :  { %v1733_v11 = vpop.permute.xlu0 %1732 }
 0x92a   :  { %v3178_v12 = vsel %vm332_vm9, %v1794_v10, %v1733_v11  ;;  %v1763_v7 = vpop.permute.xlu1 %1762 }
 0x92d   :  { %v1827_v8 = vpop.permute.xlu0 %1826 }
 0x92e   :  { %2441 = vmatprep.subr.mxu1 %v1827_v8  ;;  %v1719_v10 = vpop.permute.xlu1 %1718 }
 0x92f   :  { %2442 = vmatpush3.msra.mxu1 %v1827_v8 }
 0x930   :  { %2456 = vmatprep.subr.mxu1 %v2534_v42 }
 0x931   :  { %v1749_v14 = vpop.permute.xlu0 %1748 }
 0x932   :  { %v1735_v11 = vpop.permute.xlu1 %1734 }
 0x936   :  { %v1751_v8 = vpop.permute.xlu1 %1750 }
 0x93a   :  { %v1767_v16 = vpop.permute.xlu1 %1766 }
 0x9c8   :  { %v2435_v25 = vpop.f32.mrf.mxu0 }
 0x9c9   :  { %v1659_v21 = vadd.f32 %v2435_v25, %v1568_v19 }
 0x9ca   :  { %v1653_v9 = vpop.f32.mrf.mxu0 }
 0x9cb   :  { %v1673_v26 = vmax.f32 %v1659_v21, 0.0  ;;  %v1654_v34 = vadd.f32 %v1653_v9, %v1568_v19  ;;  %v1765_v21 = vpop.permute.xlu0 %1764 }
 0x9cc   :  { %v2438_v39 = vpop.f32.mrf.mxu0 }
 0x9cd   :  { %v1681_v1 = vmul.f32 %v1679_v30, %v1673_v26  ;;  %v1672_v41 = vmax.f32 %v1654_v34, 0.0  ;;  %v1669_v20 = vadd.f32 %v2438_v39, %v1568_v19  ;;  %v1791_v26 = vsel %vm318_vm8, %v2725_v54, %v1703_v5 }
 0x9ce   :  { %v1663_v6 = vpop.f32.mrf.mxu0 }
 0x9cf   :  { %v1689_v13 = vadd.f32 %v1687_v31, %v1681_v1  ;;  %v1680_v24 = vmul.f32 %v1679_v30, %v1672_v41  ;;  %v1675_v33 = vmax.f32 %v1669_v20, 0.0  ;;  %v1664_v47 = vadd.f32 %v1663_v6, %v1568_v19 }
 0x9d0   :  { %v1789_v19 = vsel %vm318_vm8, %v2720_v44, %v3162_v51  ;;  %v1806_v44 = vsel %vm1805_vm14, %v3168_v63, %v1761_v4  ;;  %v1795_v51 = vsel %vm323_vm7, %v1791_v26, %v1719_v10  ;;  %v1803_v1 = vsel %vm1800_vm13, %v3178_v12, %v1749_v14  ;;  %v2301_v4 = vld [vmem:[%s3368_s2 + $0x5] ss:$0 sm:$0xff] }
 0x9d1   :  { %v1688_v56 = vadd.f32 %v1687_v31, %v1680_v24  ;;  %v1683_v62 = vmul.f32 %v1679_v30, %v1675_v33  ;;  %v1674_v2 = vmax.f32 %v1664_v47, 0.0  ;;  %1778 = vrot.lane.b32.xlu1 %v1689_v13, %s2533_s16  ;;  %v1793_v25 = vsel %vm323_vm7, %v1789_v19, %v3165_v61 }
 0x9d2   :  { %v1797_v60 = vsel %vm332_vm9, %v1793_v25, %v3172_v3  ;;  %v1808_v20 = vsel %vm1805_vm14, %v1803_v1, %v1765_v21 }
 0x9d3   :  { %v1691_v27 = vadd.f32 %v1687_v31, %v1683_v62  ;;  %v1682_v37 = vmul.f32 %v1679_v30, %v1674_v2  ;;  %1776 = vrot.lane.b32.xlu0 %v1688_v56, %s2533_s16  ;;  %v1802_v30 = vsel %vm1800_vm13, %v1797_v60, %v3170_v0 }
 0x9d4   :  { %v1807_v18 = vsel %vm1805_vm14, %v1802_v30, %v1763_v7 }
 0x9d5   :  { %v1690_v57 = vadd.f32 %v1687_v31, %v1682_v37  ;;  %1782 = vrot.lane.b32.xlu1 %v1691_v27, %s2533_s16  ;;  %v1799_v31 = vsel %vm332_vm9, %v1795_v51, %v1735_v11 }
 0x9d6   :  { %v1804_v0 = vsel %vm1800_vm13, %v1799_v31, %v1751_v8 }
 0x9d7   :  { %1780 = vrot.lane.b32.xlu0 %v1690_v57, %s2533_s16  ;;  %v1809_v63 = vsel %vm1805_vm14, %v1804_v0, %v1767_v16 }
 0x9d9   :  { %1986 = vrot.lane.b32.xlu1 %v17_v52, %s2535_s19 }
 0x9db   :  { %1984 = vrot.lane.b32.xlu0 %v3124_v36, %s2535_s19  ;;  %v29_v36 = vld [vmem:[%s3366_s1 + $0xd8] sm:$0xff] }
 0x9dd   :  { %1982 = vrot.lane.b32.xlu1 %v16_v29, %s2535_s19 }
 0x9df   :  { %1980 = vrot.lane.b32.xlu0 %v3137_v43, %s2535_s19  ;;  %v26_v43 = vld [vmem:[%s3366_s1 + $0xa8] sm:$0xff] }
 0x9e1   :  { %2108 = vrot.lane.b32.xlu1 %v30_v38, %s2535_s19 }
 0x9e3   :  { %2110 = vrot.lane.b32.xlu0 %v31_v45, %s2535_s19 }
 0x9e5   :  { %2104 = vrot.lane.b32.xlu1 %v28_v55, %s2535_s19 }
 0x9e7   :  { %2106 = vrot.lane.b32.xlu0 %v29_v36, %s2535_s19 }
 0x9e9   :  { %2100 = vrot.lane.b32.xlu1 %v26_v43, %s2535_s19 }
 0x9eb   :  { %2102 = vrot.lane.b32.xlu0 %v27_v40, %s2535_s19 }
 0x9ed   :  { %2096 = vrot.lane.b32.xlu1 %v24_v46, %s2535_s19 }
 0x9ef   :  { %2098 = vrot.lane.b32.xlu0 %v25_v59, %s2535_s19  ;;  %v2295_v59 = vld [vmem:[%s3368_s2 + $0x3] ss:$0 sm:$0xff] }
 0x9f1   :  { %2092 = vrot.lane.b32.xlu1 %v22_v48, %s2535_s19 }
 0x9f3   :  { %2094 = vrot.lane.b32.xlu0 %v23_v50, %s2535_s19 }
 0x9f5   :  { %2088 = vrot.lane.b32.xlu1 %v20_v22, %s2535_s19  ;;  %v2300_v22 = vld [vmem:[%s3368_s2 + $0x4] ss:$0 sm:$0xff] }
 0x9f7   :  { %2090 = vrot.lane.b32.xlu0 %v21_v58, %s2535_s19 }
 0x9f9   :  { %2084 = vrot.lane.b32.xlu1 %v18_v53, %s2535_s19 }
 0x9fb   :  { %2086 = vrot.lane.b32.xlu0 %v19_v49, %s2535_s19 }
 0xa43   :  { %v1779_v9 = vpop.permute.xlu1 %1778 }
 0xa44   :  { %v1812_v61 = vsel %vm1810_vm15, %v1807_v18, %v1779_v9 }
 0xa45   :  { %v1777_v3 = vpop.permute.xlu0 %1776  ;;  %v1817_v41 = vsel %vm1815_vm1, %v1812_v61, %v2601_v23 }
 0xa46   :  { %v1811_v34 = vsel %vm1810_vm15, %v1806_v44, %v1777_v3 }
 0xa47   :  { %v1783_v39 = vpop.permute.xlu1 %1782  ;;  %v1816_v54 = vsel %vm1815_vm1, %v1811_v34, %v2604_v28 }
 0xa48   :  { %2443 = vmatprep.mubr.msk.f32.mxu1 %vm57_vm0, %v1816_v54  ;;  %v1814_v6 = vsel %vm1810_vm15, %v1809_v63, %v1783_v39 }
 0xa49   :  { %2444 = vmatmul.mubr.msk.f32.vlgmr.msra.gmra.mxu1 %vm57_vm0, %v1817_v41  ;;  %v1781_v13 = vpop.permute.xlu0 %1780  ;;  %v1819_v23 = vsel %vm1815_vm1, %v1814_v6, %v2608_v32 }
 0xa4a   :  { %v1813_v24 = vsel %vm1810_vm15, %v1808_v20, %v1781_v13 }
 0xa4b   :  { %v1818_v28 = vsel %vm1815_vm1, %v1813_v24, %v2611_v35  ;;  %v1987_v12 = vpop.permute.xlu1 %1986 }
 0xa4c   :  { %2446 = vmatprep.mubr.msk.f32.mxu1 %vm57_vm0, %v1818_v28 }
 0xa4d   :  { %2447 = vmatmul.mubr.msk.f32.gmra.mxu1 %vm57_vm0, %v1819_v23  ;;  %v1985_v33 = vpop.permute.xlu0 %1984 }
 0xa4e   :  { %v1990_v47 = vsel %vm1988_vm2, %v1985_v33, %v1987_v12  ;;  %2488 = vmatprep.mubr.msk.f32.mxu1 %vm2536_vm3, %v2534_v42 }
 0xa4f   :  { %v1983_v56 = vpop.permute.xlu1 %1982  ;;  %2450 = vmatpush3.msra.mxu0 %v1990_v47  ;;  %v2302_v47 = vld [vmem:[%s3368_s2 + $0x6] ss:$0 sm:$0xff] }
 0xa50   :  { %2451 = vmatprep.subr.mxu0 %v2534_v42 }
 0xa51   :  { %v1981_v62 = vpop.permute.xlu0 %1980 }
 0xa52   :  { %v1989_v2 = vsel %vm1988_vm2, %v1981_v62, %v1983_v56 }
 0xa53   :  { %2452 = vmatpush3.msra.mxu0 %v1989_v2  ;;  %v2109_v35 = vpop.permute.xlu1 %2108 }
 0xa55   :  { %v2111_v27 = vpop.permute.xlu0 %2110 }
 0xa56   :  { %2457 = vmatpush3.msra.mxu1 %v2111_v27 }
 0xa57   :  { %2458 = vmatprep.subr.mxu1 %v2534_v42  ;;  %v2105_v37 = vpop.permute.xlu1 %2104 }
 0xa58   :  { %2459 = vmatpush3.msra.mxu1 %v2109_v35  ;;  %v2304_v35 = vld [vmem:[%s3368_s2 + $0x7] ss:$0 sm:$0xff] }
 0xa59   :  { %2460 = vmatprep.subr.mxu1 %v2534_v42  ;;  %v2107_v32 = vpop.permute.xlu0 %2106 }
 0xa5a   :  { %2461 = vmatpush3.msra.mxu1 %v2107_v32 }
 0xa5b   :  { %2462 = vmatprep.subr.mxu1 %v2534_v42  ;;  %v2101_v52 = vpop.permute.xlu1 %2100 }
 0xa5c   :  { %2463 = vmatpush3.msra.mxu1 %v2105_v37 }
 0xa5d   :  { %2464 = vmatprep.subr.mxu1 %v2534_v42  ;;  %v2103_v57 = vpop.permute.xlu0 %2102 }
 0xa5e   :  { %2465 = vmatpush3.msra.mxu1 %v2103_v57 }
 0xa5f   :  { %2466 = vmatprep.subr.mxu1 %v2534_v42  ;;  %v2097_v38 = vpop.permute.xlu1 %2096 }
 0xa60   :  { %2467 = vmatpush3.msra.mxu1 %v2101_v52 }
 0xa61   :  { %2468 = vmatprep.subr.mxu1 %v2534_v42  ;;  %v2099_v29 = vpop.permute.xlu0 %2098 }
 0xa62   :  { %2469 = vmatpush3.msra.mxu1 %v2099_v29 }
 0xa63   :  { %2470 = vmatprep.subr.mxu1 %v2534_v42  ;;  %v2093_v55 = vpop.permute.xlu1 %2092 }
 0xa64   :  { %2471 = vmatpush3.msra.mxu1 %v2097_v38 }
 0xa65   :  { %2472 = vmatprep.subr.mxu1 %v2534_v42  ;;  %v2095_v45 = vpop.permute.xlu0 %2094 }
 0xa66   :  { %2473 = vmatpush3.msra.mxu1 %v2095_v45  ;;  %v2537_v45 = vmov 1966171168  }
 0xa67   :  { %2474 = vmatprep.subr.mxu1 %v2534_v42  ;;  %v2089_v43 = vpop.permute.xlu1 %2088 }
 0xa68   :  { %2475 = vmatpush3.msra.mxu1 %v2093_v55  ;;  %v2206_v55 = vunpack.c.l.s4 %v2537_v45 }
 0xa69   :  { %2476 = vmatprep.subr.mxu1 %v2534_v42  ;;  %v2091_v36 = vpop.permute.xlu0 %2090 }
 0xa6a   :  { %2477 = vmatpush3.msra.mxu1 %v2091_v36  ;;  %v2207_v36 = vunpack.c.0.s8 %v2206_v55 }
 0xa6b   :  { %2478 = vmatprep.subr.mxu1 %v2534_v42  ;;  %v2085_v46 = vpop.permute.xlu1 %2084 }
 0xa6c   :  { %2479 = vmatpush3.msra.mxu1 %v2089_v43  ;;  %v2210_v43 = vsub.s32 %v2207_v36, %v2595_v15  ;;  %v2518_v15 = vld [vmem:[%s3367_s0 + $0x8] sm:$0xff] }
 0xa6d   :  { %2480 = vmatprep.subr.mxu1 %v2534_v42  ;;  %v2087_v40 = vpop.permute.xlu0 %2086 }
 0xa6e   :  { %2481 = vmatpush3.msra.mxu1 %v2087_v40 }
 0xa6f   :  { %2482 = vmatprep.subr.mxu1 %v2534_v42 }
 0xa70   :  { %2483 = vmatpush3.msra.mxu1 %v2085_v46 }
 0xa71   :  { %2484 = vmatprep.subr.mxu1 %v2534_v42 }
 0xa72   :  { %2485 = vmatpush3.msra.mxu1 %v1987_v12 }
 0xa73   :  { %2486 = vmatprep.subr.mxu1 %v2534_v42 }
 0xa74   :  { %2487 = vmatpush3.msra.mxu1 %v1983_v56 }
 0xb09   :  { %v2445_v48 = vpop.f32.mrf.mxu1 }
 0xb0a   :  { %v1916_v50 = vadd.f32 %v2445_v48, %v2295_v59 }
 0xb0b   :  { %v1910_v58 = vpop.f32.mrf.mxu1 }
 0xb0c   :  { %v1930_v53 = vmax.f32 %v1916_v50, 0.0  ;;  %v1911_v49 = vadd.f32 %v2295_v59, %v1910_v58 }
 0xb0d   :  { %v2448_v5 = vpop.f32.mrf.mxu1 }
 0xb0e   :  { %v1938_v42 = vmul.f32 %v2300_v22, %v1930_v53  ;;  %v1929_v7 = vmax.f32 %v1911_v49, 0.0  ;;  %v1926_v10 = vadd.f32 %v2448_v5, %v2295_v59 }
 0xb0f   :  { %v1920_v11 = vpop.f32.mrf.mxu1 }
 0xb10   :  { %v1946_v8 = vadd.f32 %v2301_v4, %v1938_v42  ;;  %v1937_v14 = vmul.f32 %v2300_v22, %v1929_v7  ;;  %v1932_v16 = vmax.f32 %v1926_v10, 0.0  ;;  %v1921_v19 = vadd.f32 %v2295_v59, %v1920_v11  ;;  %v2517_v42 = vld [vmem:[%s3367_s0] sm:$0xff]  ;;  %v2519_v11 = vld [vmem:[%s3367_s0 + $0x10] sm:$0xff] }
 0xb12   :  { %v1945_v25 = vadd.f32 %v2301_v4, %v1937_v14  ;;  %v1940_v21 = vmul.f32 %v2300_v22, %v1932_v16  ;;  %v1931_v60 = vmax.f32 %v1921_v19, 0.0  ;;  %v1950_v30 = vsel %vm57_vm0, %v1946_v8, 0.0 }
 0xb14   :  { %v1949_v9 = vsel %vm57_vm0, %v1945_v25, 0.0  ;;  %v1948_v26 = vadd.f32 %v2301_v4, %v1940_v21  ;;  %v1939_v18 = vmul.f32 %v2300_v22, %v1931_v60 }
 0xb15   :  { %v1951_v44 = vadd.f32 %v1950_v30, %v1949_v9 }
 0xb16   :  { %v1947_v51 = vadd.f32 %v2301_v4, %v1939_v18  ;;  %v1959_v3 = vsel %vm57_vm0, %v1948_v26, 0.0 }
 0xb17   :  { %v1952_v61 = vrot.slane %v1951_v44, 4 }
 0xb18   :  { %v1958_v31 = vsel %vm57_vm0, %v1947_v51, 0.0 }
 0xb19   :  { %v1953_v34 = vadd.f32 %v1952_v61, %v1951_v44  ;;  %v1960_v0 = vadd.f32 %v1959_v3, %v1958_v31 }
 0xb1b   :  { %v1954_v39 = vrot.slane %v1953_v34, 2  ;;  %v1961_v54 = vrot.slane %v1960_v0, 4 }
 0xb1d   :  { %v1955_v1 = vadd.f32 %v1954_v39, %v1953_v34  ;;  %v1962_v63 = vadd.f32 %v1961_v54, %v1960_v0 }
 0xb1f   :  { %v1956_v41 = vrot.slane %v1955_v1, 1  ;;  %v1963_v20 = vrot.slane %v1962_v63, 2 }
 0xb21   :  { %v1964_v6 = vadd.f32 %v1963_v20, %v1962_v63  ;;  %v1957_v24 = vadd.f32 %v1956_v41, %v1955_v1 }
 0xb23   :  { %v1965_v13 = vrot.slane %v1964_v6, 1  ;;  %v1968_v12 = vmul.f32 0.0625, %v1957_v24 }
 0xb25   :  { %v1966_v28 = vadd.f32 %v1965_v13, %v1964_v6 }
 0xb27   :  { %v1969_v23 = vmul.f32 0.0625, %v1966_v28 }
 0xb29   :  { %v1977_v33 = vsel %vm1976_vm4, %v1969_v23, %v1968_v12 }
 0xb2a   :  { %2454 = vmatmul.mubr.msk.f32.vlgmr.msra.gmra.mxu0 %vm57_vm0, %v1977_v33 }
 0xbea   :  { %v2061_v56 = vpop.f32.mrf.mxu0 }
 0xbeb   :  { %v2062_v62 = vadd.f32 %v2302_v47, %v2061_v56 }
 0xbec   :  { %v2455_v2 = vpop.f32.mrf.mxu0 }
 0xbed   :  { %v2065_v27 = vmax.f32 %v2062_v62, 0.0 }
 0xbef   :  { %2489 = vmatmul.mubr.f32.vlgmr.msra.gmra.mxu1 %v2065_v27 }
 0xcaf   :  { %v2194_v32 = vpop.f32.mrf.mxu1 }
 0xcb0   :  { %v2195_v37 = vadd.f32 %v2304_v35, %v2194_v32 }
 0xcb1   :  { %v2490_v57 = vpop.f32.mrf.mxu1 }
 0xcb2   :  { %v2305_v52 = vmul.f32 -1.442695, %v2195_v37 }
 0xcb4   :  { %2508 = vpow2.f32 %v2305_v52 }
 0xcc1   :  { %v2509_v29 = vpop.eup %2508 }
 0xcc2   :  { %v2201_v38 = vadd.f32 1.0, %v2509_v29 }
 0xcc4   :  { %2510 = vrcp.f32 %v2201_v38 }
 0xcd1   :  { %v2511_v40 = vpop.eup %2510 }
 0xcd2   :  { %v2211_v46 = vrot.slane %v2511_v40, %v2210_v43 }
 0xcd4   :  { %v2212_v59 = vcombine.high %v2211_v46, %v2211_v46  ;;  %v2219_v48 = vrot.slane %v2211_v46, %v2210_v43 }
 0xcd6   :  { %v2226_v50 = vrot.slane %v2212_v59, %v2210_v43  ;;  %v2230_v22 = vrot.slane %v2219_v48, %v2687_v17 }
 0xcd8   :  { %v2234_v58 = vrot.slane %v2226_v50, %v2687_v17  ;;  %v2237_v53 = vmul.f32 %v2230_v22, %v1945_v25  ;;  %v2238_v49 = vmul.f32 %v2230_v22, %v1946_v8  ;;  %v2520_v17 = vld [vmem:[%s3367_s0 + $0x18] sm:$0xff] }
 0xcda   :  { %v2239_v4 = vmul.f32 %v2234_v58, %v1947_v51  ;;  %v2240_v5 = vmul.f32 %v2234_v58, %v1948_v26  ;;  %v2241_v7 = vadd.f32 %v2517_v42, %v2237_v53  ;;  %v2242_v10 = vadd.f32 %v2518_v15, %v2238_v49 }
 0xcdc   :  { %v2243_v14 = vadd.f32 %v2519_v11, %v2239_v4  ;;  %v2244_v8 = vadd.f32 %v2520_v17, %v2240_v5  ;;  %2245 = vst.msk [vmem:[%s3369_s3] sm:$0xff] %vm57_vm0, %v2241_v7  ;;  %2246 = vst.msk [vmem:[%s3369_s3 + $0x8] sm:$0xff] %vm57_vm0, %v2242_v10 }
 0xcde   :  { %2247 = vst.msk [vmem:[%s3369_s3 + $0x10] sm:$0xff] %vm57_vm0, %v2243_v14  ;;  %2248 = vst.msk [vmem:[%s3369_s3 + $0x18] sm:$0xff] %vm57_vm0, %v2244_v8 }

</bundles_post_ra>
